<compile_context>
chip_gen: v7x
topology: tpu7x:2x2x1
jax: 0.10.0
libtpu: 0.0.40
codegen_flags: <defaults>
</compile_context>

<pallas_src>
from functools import partial

import jax
import jax.numpy as jnp
from jax.experimental import pallas as pl
from jax.experimental.pallas import tpu as pltpu


# ----------------------------------------------------------------------------
# Fused forward kernel (one grid step == whole batch)
# ----------------------------------------------------------------------------
def _make_duel_kernel(B, H1, W1, C1, C2, A):
    """Builds the fused kernel for the fixed conv geometry of this module."""
    K2, S2 = 4, 2                       # conv2: 4x4 stride 2
    H2 = (H1 - K2) // S2 + 1            # 3
    W2 = (W1 - K2) // S2 + 1            # 3
    K3 = 3                              # conv3: 3x3 stride 1 -> 1x1 spatial
    HALF = H1 // 2

    def kernel(p1_ref, w1_ref, b1_ref, w2_ref, b2_ref, w3_ref, b3_ref,
               wf_ref, bf_ref, wh_ref, bh_ref,
               out_ref, a1_ref, a2_ref):
        f32 = jnp.float32

        # ---- conv1: one batched matmul over all B*H1*W1 patches -------------
        # p1 rows are ordered (w1, h1 % 2, h1 // 2, b); features (i, j, c).
        o1 = jnp.dot(p1_ref[...], w1_ref[...], preferred_element_type=f32)
        o1 = jnp.maximum(o1 + b1_ref[...], 0.0)            # (B*H1*W1, C1)

        # a1 layout: rows = (parity(h1), h1//2, b), lanes = (w1, c1)
        for w in range(W1):
            a1_ref[:, w * C1:(w + 1) * C1] = o1[w * H1 * B:(w + 1) * H1 * B, :]

        # ---- conv2: 4x4 / stride 2, batched over (h_out, b) rows -------------
        b2v = b2_ref[...]
        for wo in range(W2):
            acc = None
            for i in range(K2):
                # rows with h1 = 2*ho + i for ho = 0..H2-1, all b (contiguous)
                r0 = ((i % 2) * HALF + i // 2) * B
                lhs = a1_ref[r0:r0 + H2 * B,
                             S2 * wo * C1:(S2 * wo + K2) * C1]   # (H2*B, K2*C1)
                contrib = jnp.dot(lhs, w2_ref[i * K2 * C1:(i + 1) * K2 * C1, :],
                                  preferred_element_type=f32)
                acc = contrib if acc is None else acc + contrib
            # a2 layout: rows = (h2, b), lanes = (w2, c2)
            a2_ref[:, wo * C2:(wo + 1) * C2] = jnp.maximum(acc + b2v, 0.0)

        # ---- conv3: 3x3 / stride 1 -> 1x1 spatial, batched over b ------------
        acc3 = None
        for i in range(K3):
            contrib = jnp.dot(a2_ref[i * B:(i + 1) * B, :],
                              w3_ref[i * K3 * C2:(i + 1) * K3 * C2, :],
                              preferred_element_type=f32)
            acc3 = contrib if acc3 is None else acc3 + contrib
        # spatial output is 1x1, so the PyTorch (C,H,W) flatten is just the
        # channel vector.
        flat = jnp.maximum(acc3 + b3_ref[...], 0.0)        # (B, C3)

        # ---- fused FC trunk: [fc_value | fc_advantage] -----------------------
        h = jnp.dot(flat, wf_ref[...], preferred_element_type=f32) + bf_ref[...]
        h = jnp.maximum(h, 0.0)                            # (B, 2*hidden)

        # ---- fused dueling heads: one matmul, lanes = [V, A_0..A_{n-1}, 0..] -
        head = jnp.dot(h, wh_ref[...], preferred_element_type=f32) + bh_ref[...]
        v = head[:, 0:1]                                   # (B, 1)
        adv = head[:, 1:1 + A]                             # (B, A)
        q = v + adv - jnp.sum(adv, axis=1, keepdims=True) * (1.0 / A)

        out_ref[...] = jnp.zeros_like(out_ref)             # (B, 128) pad
        out_ref[:, 0:A] = q

    return kernel


# ----------------------------------------------------------------------------
# Parameter prep (one-time host-side layout work)
# ----------------------------------------------------------------------------
def prepare_params(params):
    def conv_mat(w_pt):  # (Cout, Cin, kh, kw) -> (kh*kw*Cin, Cout), rows (i,j,c)
        return jnp.transpose(w_pt, (2, 3, 1, 0)).reshape(-1, w_pt.shape[0])

    hidden = params["wv"].shape[0]
    A = params["wa"].shape[1]

    # Fused dueling-head weight: lanes [value | advantage(0..A-1) | zero pad].
    wh = jnp.zeros((2 * hidden, 128), jnp.float32)
    wh = wh.at[:hidden, 0:1].set(params["wv"])
    wh = wh.at[hidden:, 1:1 + A].set(params["wa"])
    bh = jnp.zeros((1, 128), jnp.float32)
    bh = bh.at[0, 0:1].set(params["bv"])
    bh = bh.at[0, 1:1 + A].set(params["ba"])

    return {
        "w1m": conv_mat(params["w1"]), "b1": params["b1"].reshape(1, -1),
        "w2m": conv_mat(params["w2"]), "b2": params["b2"].reshape(1, -1),
        "w3m": conv_mat(params["w3"]), "b3": params["b3"].reshape(1, -1),
        # fused [fc_value | fc_advantage] trunk -> lane-dense (B, 1024) output
        "wf": jnp.concatenate([params["wfv"], params["wfa"]], axis=1),
        "bf": jnp.concatenate([params["bfv"], params["bfa"]]).reshape(1, -1),
        "wh": wh, "bh": bh,
    }


# ----------------------------------------------------------------------------
# Forward pass wrapper (single pallas_call, single grid step)
# ----------------------------------------------------------------------------
@partial(jax.jit, static_argnames=("n_actions",))
def duel_ddqn_forward(prep, x_nchw, *, n_actions):
    x = jnp.transpose(x_nchw, (0, 2, 3, 1)).astype(jnp.float32)   # NCHW -> NHWC
    B, H, W, C = x.shape
    KH = KW = 8
    S1 = 4
    H1, W1 = (H - KH) // S1 + 1, (W - KW) // S1 + 1
    H2, W2 = (H1 - 4) // 2 + 1, (W1 - 4) // 2 + 1
    H3, W3 = H2 - 2, W2 - 2
    assert (H1, W1, H2, W2, H3, W3) == (8, 8, 3, 3, 1, 1), \
        "fused kernel hard-codes the 36x36 -> 8 -> 3 -> 1 conv geometry"

    C1 = prep["w1m"].shape[1]            # 32
    C2 = prep["w2m"].shape[1]            # 64
    A = n_actions
    F1 = KH * KW * C                     # 256

    # conv1 im2col (input-boundary XLA glue only), feature order (i, j, c),
    # row order (w1, h1 % 2, h1 // 2, b) so the kernel scatters conv1 output
    # with W1 contiguous stores and conv2 reads contiguous row blocks.
    cols = [x[:, i:i + S1 * H1:S1, j:j + S1 * W1:S1, :]
            for i in range(KH) for j in range(KW)]
    P = jnp.concatenate(cols, axis=-1)                  # (B, H1, W1, F1)
    P = P.reshape(B, H1 // 2, 2, W1, F1)                # (b, half, parity, w1, F)
    P = jnp.transpose(P, (3, 2, 1, 0, 4))               # (w1, parity, half, b, F)
    p1 = P.reshape(B * H1 * W1, F1)                     # (B*64, 256)

    def const_spec(arr):
        return pl.BlockSpec(arr.shape, lambda i: (0, 0))

    kernel = _make_duel_kernel(B, H1, W1, C1, C2, A)

    grid_spec = pltpu.PrefetchScalarGridSpec(
        num_scalar_prefetch=0,
        grid=(1,),
        in_specs=[
            const_spec(p1),                                        # conv1 patches
            const_spec(prep["w1m"]), const_spec(prep["b1"]),
            const_spec(prep["w2m"]), const_spec(prep["b2"]),
            const_spec(prep["w3m"]), const_spec(prep["b3"]),
            const_spec(prep["wf"]), const_spec(prep["bf"]),
            const_spec(prep["wh"]), const_spec(prep["bh"]),
        ],
        out_specs=pl.BlockSpec((B, 128), lambda i: (0, 0)),        # padded Q rows
        scratch_shapes=[
            pltpu.VMEM((H1 * B, W1 * C1), jnp.float32),            # conv1 output
            pltpu.VMEM((H2 * B, W2 * C2), jnp.float32),            # conv2 output
        ],
    )

    out = pl.pallas_call(
        kernel,
        out_shape=jax.ShapeDtypeStruct((B, 128), jnp.float32),
        grid_spec=grid_spec,
        compiler_params=pltpu.CompilerParams(
            dimension_semantics=("arbitrary",)),
    )(p1, prep["w1m"], prep["b1"], prep["w2m"], prep["b2"],
      prep["w3m"], prep["b3"], prep["wf"], prep["bf"],
      prep["wh"], prep["bh"])

    return out[:, :A]                                     # (B, n_actions)


# ----------------------------------------------------------------------------
# Deterministic synthetic parameters (shapes from the module's __init__)
# ----------------------------------------------------------------------------
def init_params(key, in_ch, conv_out, n_actions, hidden=512):
    ks = jax.random.split(key, 14)

    def init(k, shape, fan_in):
        return jax.random.normal(k, shape, jnp.float32) / jnp.sqrt(float(fan_in))

    return {
        # conv weights kept in PyTorch layout (Cout, Cin, kh, kw)
        "w1": init(ks[0], (32, in_ch, 8, 8), in_ch * 64),
        "b1": init(ks[1], (32,), in_ch * 64),
        "w2": init(ks[2], (64, 32, 4, 4), 32 * 16),
        "b2": init(ks[3], (64,), 32 * 16),
        "w3": init(ks[4], (64, 64, 3, 3), 64 * 9),
        "b3": init(ks[5], (64,), 64 * 9),
        # linear weights stored as (in, out)
        "wfv": init(ks[6], (conv_out, hidden), conv_out),
        "bfv": init(ks[7], (hidden,), conv_out),
        "wfa": init(ks[8], (conv_out, hidden), conv_out),
        "bfa": init(ks[9], (hidden,), conv_out),
        "wv": init(ks[10], (hidden, 1), hidden),
        "bv": init(ks[11], (1,), hidden),
        "wa": init(ks[12], (hidden, n_actions), hidden),
        "ba": init(ks[13], (n_actions,), hidden),
    }


# ----------------------------------------------------------------------------
# Pure-JAX reference (sanity check of the fused Pallas path)
# ----------------------------------------------------------------------------
def reference_forward(params, x_nchw):
    hp = jax.lax.Precision.HIGHEST
    x = jnp.transpose(x_nchw, (0, 2, 3, 1)).astype(jnp.float32)

    def conv(x, w_pt, b, stride):
        w = jnp.transpose(w_pt, (2, 3, 1, 0))  # HWIO
        y = jax.lax.conv_general_dilated(
            x, w, (stride, stride), "VALID",
            dimension_numbers=("NHWC", "HWIO", "NHWC"), precision=hp)
        return jax.nn.relu(y + b)

    x = conv(x, params["w1"], params["b1"], 4)
    x = conv(x, params["w2"], params["b2"], 2)
    x = conv(x, params["w3"], params["b3"], 1)
    B = x.shape[0]
    flat = jnp.transpose(x, (0, 3, 1, 2)).reshape(B, -1)
    vh = jax.nn.relu(jnp.dot(flat, params["wfv"], precision=hp) + params["bfv"])
    ah = jax.nn.relu(jnp.dot(flat, params["wfa"], precision=hp) + params["bfa"])
    v = jnp.dot(vh, params["wv"], precision=hp) + params["bv"]
    a = jnp.dot(ah, params["wa"], precision=hp) + params["ba"]
    return v + a - jnp.mean(a, axis=1, keepdims=True)


if __name__ == "__main__":
    B, C, H, W = 2, 4, 36, 36          # 36 -> 8 -> 3 -> 1 spatial; conv_out = 64
    n_actions = 6
    conv_out = 64 * 1 * 1

    key = jax.random.PRNGKey(0)
    kx, kp = jax.random.split(key)
    x = jax.random.normal(kx, (B, C, H, W), jnp.float32)   # PyTorch-style NCHW
    params = init_params(kp, C, conv_out, n_actions)
    prep = prepare_params(params)

    q = duel_ddqn_forward(prep, x, n_actions=n_actions)
    q = jax.block_until_ready(q)

    q_ref = reference_forward(params, x)
    max_err = float(jnp.max(jnp.abs(q - q_ref)))
    assert q.shape == (B, n_actions), q.shape
    assert max_err < 1e-2, f"mismatch vs reference: {max_err}"

    print("KERNEL_OK")
</pallas_src>

<mosaic_0001>
module attributes {stable_mosaic.version = 11 : i64} {
  func.func @kernel(%arg0: i32, %arg1: memref<128x256xf32, #tpu.memory_space<vmem>>, %arg2: memref<256x32xf32, #tpu.memory_space<vmem>>, %arg3: memref<1x32xf32, #tpu.memory_space<vmem>>, %arg4: memref<512x64xf32, #tpu.memory_space<vmem>>, %arg5: memref<1x64xf32, #tpu.memory_space<vmem>>, %arg6: memref<576x64xf32, #tpu.memory_space<vmem>>, %arg7: memref<1x64xf32, #tpu.memory_space<vmem>>, %arg8: memref<64x1024xf32, #tpu.memory_space<vmem>>, %arg9: memref<1x1024xf32, #tpu.memory_space<vmem>>, %arg10: memref<1024x128xf32, #tpu.memory_space<vmem>>, %arg11: memref<1x128xf32, #tpu.memory_space<vmem>>, %arg12: memref<2x128xf32, #tpu.memory_space<vmem>>, %arg13: memref<16x256xf32, #tpu.memory_space<vmem>>, %arg14: memref<6x192xf32, #tpu.memory_space<vmem>>) attributes {dimension_semantics = [#tpu.dimension_semantics<arbitrary>], iteration_bounds = array<i64: 1>, scalar_prefetch = 0 : i64, scratch_operands = 2 : i64, tpu.core_type = #tpu.core_type<tc>, window_params = [{pipeline_mode = #tpu.pipeline_mode<synchronous>, transform_indices = @transform_0, window_bounds = array<i64: 128, 256>}, {pipeline_mode = #tpu.pipeline_mode<synchronous>, transform_indices = @transform_1, window_bounds = array<i64: 256, 32>}, {pipeline_mode = #tpu.pipeline_mode<synchronous>, transform_indices = @transform_2, window_bounds = array<i64: 1, 32>}, {pipeline_mode = #tpu.pipeline_mode<synchronous>, transform_indices = @transform_3, window_bounds = array<i64: 512, 64>}, {pipeline_mode = #tpu.pipeline_mode<synchronous>, transform_indices = @transform_4, window_bounds = array<i64: 1, 64>}, {pipeline_mode = #tpu.pipeline_mode<synchronous>, transform_indices = @transform_5, window_bounds = array<i64: 576, 64>}, {pipeline_mode = #tpu.pipeline_mode<synchronous>, transform_indices = @transform_6, window_bounds = array<i64: 1, 64>}, {pipeline_mode = #tpu.pipeline_mode<synchronous>, transform_indices = @transform_7, window_bounds = array<i64: 64, 1024>}, {pipeline_mode = #tpu.pipeline_mode<synchronous>, transform_indices = @transform_8, window_bounds = array<i64: 1, 1024>}, {pipeline_mode = #tpu.pipeline_mode<synchronous>, transform_indices = @transform_9, window_bounds = array<i64: 1024, 128>}, {pipeline_mode = #tpu.pipeline_mode<synchronous>, transform_indices = @transform_10, window_bounds = array<i64: 1, 128>}, {pipeline_mode = #tpu.pipeline_mode<synchronous>, transform_indices = @transform_11, window_bounds = array<i64: 2, 128>}]} {
    %c0 = arith.constant 0 : index
    %c0_0 = arith.constant 0 : index
    %0 = vector.load %arg1[%c0, %c0_0] : memref<128x256xf32, #tpu.memory_space<vmem>>, vector<128x256xf32>
    %c0_1 = arith.constant 0 : index
    %c0_2 = arith.constant 0 : index
    %1 = vector.load %arg2[%c0_1, %c0_2] : memref<256x32xf32, #tpu.memory_space<vmem>>, vector<256x32xf32>
    %cst = arith.constant dense<0.000000e+00> : vector<128x32xf32>
    %2 = tpu.matmul %0, %1, %cst {dimension_numbers = #tpu.dot_dimension_numbers<[1], [0], [0], [1], [0, 0, 1, 1], [], []>} : vector<128x256xf32>, vector<256x32xf32>, vector<128x32xf32> -> vector<128x32xf32>
    %c0_3 = arith.constant 0 : index
    %c0_4 = arith.constant 0 : index
    %3 = vector.load %arg3[%c0_3, %c0_4] : memref<1x32xf32, #tpu.memory_space<vmem>>, vector<1x32xf32>
    %4 = vector.broadcast %3 : vector<1x32xf32> to vector<128x32xf32>
    %5 = arith.addf %2, %4 : vector<128x32xf32>
    %cst_5 = arith.constant 0.000000e+00 : f32
    %6 = vector.broadcast %cst_5 : f32 to vector<128x32xf32>
    %7 = arith.maximumf %5, %6 : vector<128x32xf32>
    %8 = vector.extract_strided_slice %7 {offsets = [0, 0], sizes = [16, 32], strides = [1, 1]} : vector<128x32xf32> to vector<16x32xf32>
    %c0_6 = arith.constant 0 : index
    %c0_7 = arith.constant 0 : index
    %9 = vector.load %arg13[%c0_6, %c0_7] : memref<16x256xf32, #tpu.memory_space<vmem>>, vector<16x32xf32>
    tpu.vector_store %arg13[%c0_6, %c0_7], %8 {strides = array<i32>} : memref<16x256xf32, #tpu.memory_space<vmem>>, vector<16x32xf32>,
    %10 = vector.extract_strided_slice %7 {offsets = [16, 0], sizes = [16, 32], strides = [1, 1]} : vector<128x32xf32> to vector<16x32xf32>
    %c0_8 = arith.constant 0 : index
    %c32 = arith.constant 32 : index
    %11 = vector.load %arg13[%c0_8, %c32] : memref<16x256xf32, #tpu.memory_space<vmem>>, vector<16x32xf32>
    tpu.vector_store %arg13[%c0_8, %c32], %10 {strides = array<i32>} : memref<16x256xf32, #tpu.memory_space<vmem>>, vector<16x32xf32>,
    %12 = vector.extract_strided_slice %7 {offsets = [32, 0], sizes = [16, 32], strides = [1, 1]} : vector<128x32xf32> to vector<16x32xf32>
    %c0_9 = arith.constant 0 : index
    %c64 = arith.constant 64 : index
    %13 = vector.load %arg13[%c0_9, %c64] : memref<16x256xf32, #tpu.memory_space<vmem>>, vector<16x32xf32>
    tpu.vector_store %arg13[%c0_9, %c64], %12 {strides = array<i32>} : memref<16x256xf32, #tpu.memory_space<vmem>>, vector<16x32xf32>,
    %14 = vector.extract_strided_slice %7 {offsets = [48, 0], sizes = [16, 32], strides = [1, 1]} : vector<128x32xf32> to vector<16x32xf32>
    %c0_10 = arith.constant 0 : index
    %c96 = arith.constant 96 : index
    %15 = vector.load %arg13[%c0_10, %c96] : memref<16x256xf32, #tpu.memory_space<vmem>>, vector<16x32xf32>
    tpu.vector_store %arg13[%c0_10, %c96], %14 {strides = array<i32>} : memref<16x256xf32, #tpu.memory_space<vmem>>, vector<16x32xf32>,
    %16 = vector.extract_strided_slice %7 {offsets = [64, 0], sizes = [16, 32], strides = [1, 1]} : vector<128x32xf32> to vector<16x32xf32>
    %c0_11 = arith.constant 0 : index
    %c128 = arith.constant 128 : index
    %17 = vector.load %arg13[%c0_11, %c128] : memref<16x256xf32, #tpu.memory_space<vmem>>, vector<16x32xf32>
    tpu.vector_store %arg13[%c0_11, %c128], %16 {strides = array<i32>} : memref<16x256xf32, #tpu.memory_space<vmem>>, vector<16x32xf32>,
    %18 = vector.extract_strided_slice %7 {offsets = [80, 0], sizes = [16, 32], strides = [1, 1]} : vector<128x32xf32> to vector<16x32xf32>
    %c0_12 = arith.constant 0 : index
    %c160 = arith.constant 160 : index
    %19 = vector.load %arg13[%c0_12, %c160] : memref<16x256xf32, #tpu.memory_space<vmem>>, vector<16x32xf32>
    tpu.vector_store %arg13[%c0_12, %c160], %18 {strides = array<i32>} : memref<16x256xf32, #tpu.memory_space<vmem>>, vector<16x32xf32>,
    %20 = vector.extract_strided_slice %7 {offsets = [96, 0], sizes = [16, 32], strides = [1, 1]} : vector<128x32xf32> to vector<16x32xf32>
    %c0_13 = arith.constant 0 : index
    %c192 = arith.constant 192 : index
    %21 = vector.load %arg13[%c0_13, %c192] : memref<16x256xf32, #tpu.memory_space<vmem>>, vector<16x32xf32>
    tpu.vector_store %arg13[%c0_13, %c192], %20 {strides = array<i32>} : memref<16x256xf32, #tpu.memory_space<vmem>>, vector<16x32xf32>,
    %22 = vector.extract_strided_slice %7 {offsets = [112, 0], sizes = [16, 32], strides = [1, 1]} : vector<128x32xf32> to vector<16x32xf32>
    %c0_14 = arith.constant 0 : index
    %c224 = arith.constant 224 : index
    %23 = vector.load %arg13[%c0_14, %c224] : memref<16x256xf32, #tpu.memory_space<vmem>>, vector<16x32xf32>
    tpu.vector_store %arg13[%c0_14, %c224], %22 {strides = array<i32>} : memref<16x256xf32, #tpu.memory_space<vmem>>, vector<16x32xf32>,
    %c0_15 = arith.constant 0 : index
    %c0_16 = arith.constant 0 : index
    %24 = vector.load %arg5[%c0_15, %c0_16] : memref<1x64xf32, #tpu.memory_space<vmem>>, vector<1x64xf32>
    %c0_17 = arith.constant 0 : index
    %c0_18 = arith.constant 0 : index
    %25 = vector.load %arg13[%c0_17, %c0_18] : memref<16x256xf32, #tpu.memory_space<vmem>>, vector<6x128xf32>
    %c0_19 = arith.constant 0 : index
    %c0_20 = arith.constant 0 : index
    %26 = vector.load %arg4[%c0_19, %c0_20] : memref<512x64xf32, #tpu.memory_space<vmem>>, vector<128x64xf32>
    %cst_21 = arith.constant dense<0.000000e+00> : vector<6x64xf32>
    %27 = tpu.matmul %25, %26, %cst_21 {dimension_numbers = #tpu.dot_dimension_numbers<[1], [0], [0], [1], [0, 0, 1, 1], [], []>} : vector<6x128xf32>, vector<128x64xf32>, vector<6x64xf32> -> vector<6x64xf32>
    %c8 = arith.constant 8 : index
    %c0_22 = arith.constant 0 : index
    %28 = vector.load %arg13[%c8, %c0_22] : memref<16x256xf32, #tpu.memory_space<vmem>>, vector<6x128xf32>
    %c128_23 = arith.constant 128 : index
    %c0_24 = arith.constant 0 : index
    %29 = vector.load %arg4[%c128_23, %c0_24] : memref<512x64xf32, #tpu.memory_space<vmem>>, vector<128x64xf32>
    %cst_25 = arith.constant dense<0.000000e+00> : vector<6x64xf32>
    %30 = tpu.matmul %28, %29, %cst_25 {dimension_numbers = #tpu.dot_dimension_numbers<[1], [0], [0], [1], [0, 0, 1, 1], [], []>} : vector<6x128xf32>, vector<128x64xf32>, vector<6x64xf32> -> vector<6x64xf32>
    %31 = arith.addf %27, %30 : vector<6x64xf32>
    %c2 = arith.constant 2 : index
    %c0_26 = arith.constant 0 : index
    %32 = vector.load %arg13[%c2, %c0_26] : memref<16x256xf32, #tpu.memory_space<vmem>>, vector<6x128xf32>
    %c256 = arith.constant 256 : index
    %c0_27 = arith.constant 0 : index
    %33 = vector.load %arg4[%c256, %c0_27] : memref<512x64xf32, #tpu.memory_space<vmem>>, vector<128x64xf32>
    %cst_28 = arith.constant dense<0.000000e+00> : vector<6x64xf32>
    %34 = tpu.matmul %32, %33, %cst_28 {dimension_numbers = #tpu.dot_dimension_numbers<[1], [0], [0], [1], [0, 0, 1, 1], [], []>} : vector<6x128xf32>, vector<128x64xf32>, vector<6x64xf32> -> vector<6x64xf32>
    %35 = arith.addf %31, %34 : vector<6x64xf32>
    %c10 = arith.constant 10 : index
    %c0_29 = arith.constant 0 : index
    %36 = vector.load %arg13[%c10, %c0_29] : memref<16x256xf32, #tpu.memory_space<vmem>>, vector<6x128xf32>
    %c384 = arith.constant 384 : index
    %c0_30 = arith.constant 0 : index
    %37 = vector.load %arg4[%c384, %c0_30] : memref<512x64xf32, #tpu.memory_space<vmem>>, vector<128x64xf32>
    %cst_31 = arith.constant dense<0.000000e+00> : vector<6x64xf32>
    %38 = tpu.matmul %36, %37, %cst_31 {dimension_numbers = #tpu.dot_dimension_numbers<[1], [0], [0], [1], [0, 0, 1, 1], [], []>} : vector<6x128xf32>, vector<128x64xf32>, vector<6x64xf32> -> vector<6x64xf32>
    %39 = arith.addf %35, %38 : vector<6x64xf32>
    %40 = vector.broadcast %24 : vector<1x64xf32> to vector<6x64xf32>
    %41 = arith.addf %39, %40 : vector<6x64xf32>
    %cst_32 = arith.constant 0.000000e+00 : f32
    %42 = vector.broadcast %cst_32 : f32 to vector<6x64xf32>
    %43 = arith.maximumf %41, %42 : vector<6x64xf32>
    %c0_33 = arith.constant 0 : index
    %c0_34 = arith.constant 0 : index
    %44 = vector.load %arg14[%c0_33, %c0_34] : memref<6x192xf32, #tpu.memory_space<vmem>>, vector<6x64xf32>
    tpu.vector_store %arg14[%c0_33, %c0_34], %43 {strides = array<i32>} : memref<6x192xf32, #tpu.memory_space<vmem>>, vector<6x64xf32>,
    %c0_35 = arith.constant 0 : index
    %c64_36 = arith.constant 64 : index
    %45 = vector.load %arg13[%c0_35, %c64_36] : memref<16x256xf32, #tpu.memory_space<vmem>>, vector<6x128xf32>
    %c0_37 = arith.constant 0 : index
    %c0_38 = arith.constant 0 : index
    %46 = vector.load %arg4[%c0_37, %c0_38] : memref<512x64xf32, #tpu.memory_space<vmem>>, vector<128x64xf32>
    %cst_39 = arith.constant dense<0.000000e+00> : vector<6x64xf32>
    %47 = tpu.matmul %45, %46, %cst_39 {dimension_numbers = #tpu.dot_dimension_numbers<[1], [0], [0], [1], [0, 0, 1, 1], [], []>} : vector<6x128xf32>, vector<128x64xf32>, vector<6x64xf32> -> vector<6x64xf32>
    %c8_40 = arith.constant 8 : index
    %c64_41 = arith.constant 64 : index
    %48 = vector.load %arg13[%c8_40, %c64_41] : memref<16x256xf32, #tpu.memory_space<vmem>>, vector<6x128xf32>
    %c128_42 = arith.constant 128 : index
    %c0_43 = arith.constant 0 : index
    %49 = vector.load %arg4[%c128_42, %c0_43] : memref<512x64xf32, #tpu.memory_space<vmem>>, vector<128x64xf32>
    %cst_44 = arith.constant dense<0.000000e+00> : vector<6x64xf32>
    %50 = tpu.matmul %48, %49, %cst_44 {dimension_numbers = #tpu.dot_dimension_numbers<[1], [0], [0], [1], [0, 0, 1, 1], [], []>} : vector<6x128xf32>, vector<128x64xf32>, vector<6x64xf32> -> vector<6x64xf32>
    %51 = arith.addf %47, %50 : vector<6x64xf32>
    %c2_45 = arith.constant 2 : index
    %c64_46 = arith.constant 64 : index
    %52 = vector.load %arg13[%c2_45, %c64_46] : memref<16x256xf32, #tpu.memory_space<vmem>>, vector<6x128xf32>
    %c256_47 = arith.constant 256 : index
    %c0_48 = arith.constant 0 : index
    %53 = vector.load %arg4[%c256_47, %c0_48] : memref<512x64xf32, #tpu.memory_space<vmem>>, vector<128x64xf32>
    %cst_49 = arith.constant dense<0.000000e+00> : vector<6x64xf32>
    %54 = tpu.matmul %52, %53, %cst_49 {dimension_numbers = #tpu.dot_dimension_numbers<[1], [0], [0], [1], [0, 0, 1, 1], [], []>} : vector<6x128xf32>, vector<128x64xf32>, vector<6x64xf32> -> vector<6x64xf32>
    %55 = arith.addf %51, %54 : vector<6x64xf32>
    %c10_50 = arith.constant 10 : index
    %c64_51 = arith.constant 64 : index
    %56 = vector.load %arg13[%c10_50, %c64_51] : memref<16x256xf32, #tpu.memory_space<vmem>>, vector<6x128xf32>
    %c384_52 = arith.constant 384 : index
    %c0_53 = arith.constant 0 : index
    %57 = vector.load %arg4[%c384_52, %c0_53] : memref<512x64xf32, #tpu.memory_space<vmem>>, vector<128x64xf32>
    %cst_54 = arith.constant dense<0.000000e+00> : vector<6x64xf32>
    %58 = tpu.matmul %56, %57, %cst_54 {dimension_numbers = #tpu.dot_dimension_numbers<[1], [0], [0], [1], [0, 0, 1, 1], [], []>} : vector<6x128xf32>, vector<128x64xf32>, vector<6x64xf32> -> vector<6x64xf32>
    %59 = arith.addf %55, %58 : vector<6x64xf32>
    %60 = vector.broadcast %24 : vector<1x64xf32> to vector<6x64xf32>
    %61 = arith.addf %59, %60 : vector<6x64xf32>
    %cst_55 = arith.constant 0.000000e+00 : f32
    %62 = vector.broadcast %cst_55 : f32 to vector<6x64xf32>
    %63 = arith.maximumf %61, %62 : vector<6x64xf32>
    %c0_56 = arith.constant 0 : index
    %c64_57 = arith.constant 64 : index
    %64 = vector.load %arg14[%c0_56, %c64_57] : memref<6x192xf32, #tpu.memory_space<vmem>>, vector<6x64xf32>
    tpu.vector_store %arg14[%c0_56, %c64_57], %63 {strides = array<i32>} : memref<6x192xf32, #tpu.memory_space<vmem>>, vector<6x64xf32>,
    %c0_58 = arith.constant 0 : index
    %c128_59 = arith.constant 128 : index
    %65 = vector.load %arg13[%c0_58, %c128_59] : memref<16x256xf32, #tpu.memory_space<vmem>>, vector<6x128xf32>
    %c0_60 = arith.constant 0 : index
    %c0_61 = arith.constant 0 : index
    %66 = vector.load %arg4[%c0_60, %c0_61] : memref<512x64xf32, #tpu.memory_space<vmem>>, vector<128x64xf32>
    %cst_62 = arith.constant dense<0.000000e+00> : vector<6x64xf32>
    %67 = tpu.matmul %65, %66, %cst_62 {dimension_numbers = #tpu.dot_dimension_numbers<[1], [0], [0], [1], [0, 0, 1, 1], [], []>} : vector<6x128xf32>, vector<128x64xf32>, vector<6x64xf32> -> vector<6x64xf32>
    %c8_63 = arith.constant 8 : index
    %c128_64 = arith.constant 128 : index
    %68 = vector.load %arg13[%c8_63, %c128_64] : memref<16x256xf32, #tpu.memory_space<vmem>>, vector<6x128xf32>
    %c128_65 = arith.constant 128 : index
    %c0_66 = arith.constant 0 : index
    %69 = vector.load %arg4[%c128_65, %c0_66] : memref<512x64xf32, #tpu.memory_space<vmem>>, vector<128x64xf32>
    %cst_67 = arith.constant dense<0.000000e+00> : vector<6x64xf32>
    %70 = tpu.matmul %68, %69, %cst_67 {dimension_numbers = #tpu.dot_dimension_numbers<[1], [0], [0], [1], [0, 0, 1, 1], [], []>} : vector<6x128xf32>, vector<128x64xf32>, vector<6x64xf32> -> vector<6x64xf32>
    %71 = arith.addf %67, %70 : vector<6x64xf32>
    %c2_68 = arith.constant 2 : index
    %c128_69 = arith.constant 128 : index
    %72 = vector.load %arg13[%c2_68, %c128_69] : memref<16x256xf32, #tpu.memory_space<vmem>>, vector<6x128xf32>
    %c256_70 = arith.constant 256 : index
    %c0_71 = arith.constant 0 : index
    %73 = vector.load %arg4[%c256_70, %c0_71] : memref<512x64xf32, #tpu.memory_space<vmem>>, vector<128x64xf32>
    %cst_72 = arith.constant dense<0.000000e+00> : vector<6x64xf32>
    %74 = tpu.matmul %72, %73, %cst_72 {dimension_numbers = #tpu.dot_dimension_numbers<[1], [0], [0], [1], [0, 0, 1, 1], [], []>} : vector<6x128xf32>, vector<128x64xf32>, vector<6x64xf32> -> vector<6x64xf32>
    %75 = arith.addf %71, %74 : vector<6x64xf32>
    %c10_73 = arith.constant 10 : index
    %c128_74 = arith.constant 128 : index
    %76 = vector.load %arg13[%c10_73, %c128_74] : memref<16x256xf32, #tpu.memory_space<vmem>>, vector<6x128xf32>
    %c384_75 = arith.constant 384 : index
    %c0_76 = arith.constant 0 : index
    %77 = vector.load %arg4[%c384_75, %c0_76] : memref<512x64xf32, #tpu.memory_space<vmem>>, vector<128x64xf32>
    %cst_77 = arith.constant dense<0.000000e+00> : vector<6x64xf32>
    %78 = tpu.matmul %76, %77, %cst_77 {dimension_numbers = #tpu.dot_dimension_numbers<[1], [0], [0], [1], [0, 0, 1, 1], [], []>} : vector<6x128xf32>, vector<128x64xf32>, vector<6x64xf32> -> vector<6x64xf32>
    %79 = arith.addf %75, %78 : vector<6x64xf32>
    %80 = vector.broadcast %24 : vector<1x64xf32> to vector<6x64xf32>
    %81 = arith.addf %79, %80 : vector<6x64xf32>
    %cst_78 = arith.constant 0.000000e+00 : f32
    %82 = vector.broadcast %cst_78 : f32 to vector<6x64xf32>
    %83 = arith.maximumf %81, %82 : vector<6x64xf32>
    %c0_79 = arith.constant 0 : index
    %c128_80 = arith.constant 128 : index
    %84 = vector.load %arg14[%c0_79, %c128_80] : memref<6x192xf32, #tpu.memory_space<vmem>>, vector<6x64xf32>
    tpu.vector_store %arg14[%c0_79, %c128_80], %83 {strides = array<i32>} : memref<6x192xf32, #tpu.memory_space<vmem>>, vector<6x64xf32>,
    %c0_81 = arith.constant 0 : index
    %c0_82 = arith.constant 0 : index
    %85 = vector.load %arg14[%c0_81, %c0_82] : memref<6x192xf32, #tpu.memory_space<vmem>>, vector<2x192xf32>
    %c0_83 = arith.constant 0 : index
    %c0_84 = arith.constant 0 : index
    %86 = vector.load %arg6[%c0_83, %c0_84] : memref<576x64xf32, #tpu.memory_space<vmem>>, vector<192x64xf32>
    %cst_85 = arith.constant dense<0.000000e+00> : vector<2x64xf32>
    %87 = tpu.matmul %85, %86, %cst_85 {dimension_numbers = #tpu.dot_dimension_numbers<[1], [0], [0], [1], [0, 0, 1, 1], [], []>} : vector<2x192xf32>, vector<192x64xf32>, vector<2x64xf32> -> vector<2x64xf32>
    %c2_86 = arith.constant 2 : index
    %c0_87 = arith.constant 0 : index
    %88 = vector.load %arg14[%c2_86, %c0_87] : memref<6x192xf32, #tpu.memory_space<vmem>>, vector<2x192xf32>
    %c192_88 = arith.constant 192 : index
    %c0_89 = arith.constant 0 : index
    %89 = vector.load %arg6[%c192_88, %c0_89] : memref<576x64xf32, #tpu.memory_space<vmem>>, vector<192x64xf32>
    %cst_90 = arith.constant dense<0.000000e+00> : vector<2x64xf32>
    %90 = tpu.matmul %88, %89, %cst_90 {dimension_numbers = #tpu.dot_dimension_numbers<[1], [0], [0], [1], [0, 0, 1, 1], [], []>} : vector<2x192xf32>, vector<192x64xf32>, vector<2x64xf32> -> vector<2x64xf32>
    %91 = arith.addf %87, %90 : vector<2x64xf32>
    %c4 = arith.constant 4 : index
    %c0_91 = arith.constant 0 : index
    %92 = vector.load %arg14[%c4, %c0_91] : memref<6x192xf32, #tpu.memory_space<vmem>>, vector<2x192xf32>
    %c384_92 = arith.constant 384 : index
    %c0_93 = arith.constant 0 : index
    %93 = vector.load %arg6[%c384_92, %c0_93] : memref<576x64xf32, #tpu.memory_space<vmem>>, vector<192x64xf32>
    %cst_94 = arith.constant dense<0.000000e+00> : vector<2x64xf32>
    %94 = tpu.matmul %92, %93, %cst_94 {dimension_numbers = #tpu.dot_dimension_numbers<[1], [0], [0], [1], [0, 0, 1, 1], [], []>} : vector<2x192xf32>, vector<192x64xf32>, vector<2x64xf32> -> vector<2x64xf32>
    %95 = arith.addf %91, %94 : vector<2x64xf32>
    %c0_95 = arith.constant 0 : index
    %c0_96 = arith.constant 0 : index
    %96 = vector.load %arg7[%c0_95, %c0_96] : memref<1x64xf32, #tpu.memory_space<vmem>>, vector<1x64xf32>
    %97 = vector.broadcast %96 : vector<1x64xf32> to vector<2x64xf32>
    %98 = arith.addf %95, %97 : vector<2x64xf32>
    %cst_97 = arith.constant 0.000000e+00 : f32
    %99 = vector.broadcast %cst_97 : f32 to vector<2x64xf32>
    %100 = arith.maximumf %98, %99 : vector<2x64xf32>
    %c0_98 = arith.constant 0 : index
    %c0_99 = arith.constant 0 : index
    %101 = vector.load %arg8[%c0_98, %c0_99] : memref<64x1024xf32, #tpu.memory_space<vmem>>, vector<64x1024xf32>
    %cst_100 = arith.constant dense<0.000000e+00> : vector<2x1024xf32>
    %102 = tpu.matmul %100, %101, %cst_100 {dimension_numbers = #tpu.dot_dimension_numbers<[1], [0], [0], [1], [0, 0, 1, 1], [], []>} : vector<2x64xf32>, vector<64x1024xf32>, vector<2x1024xf32> -> vector<2x1024xf32>
    %c0_101 = arith.constant 0 : index
    %c0_102 = arith.constant 0 : index
    %103 = vector.load %arg9[%c0_101, %c0_102] : memref<1x1024xf32, #tpu.memory_space<vmem>>, vector<1x1024xf32>
    %104 = vector.broadcast %103 : vector<1x1024xf32> to vector<2x1024xf32>
    %105 = arith.addf %102, %104 : vector<2x1024xf32>
    %cst_103 = arith.constant 0.000000e+00 : f32
    %106 = vector.broadcast %cst_103 : f32 to vector<2x1024xf32>
    %107 = arith.maximumf %105, %106 : vector<2x1024xf32>
    %c0_104 = arith.constant 0 : index
    %c0_105 = arith.constant 0 : index
    %108 = vector.load %arg10[%c0_104, %c0_105] : memref<1024x128xf32, #tpu.memory_space<vmem>>, vector<1024x128xf32>
    %cst_106 = arith.constant dense<0.000000e+00> : vector<2x128xf32>
    %109 = tpu.matmul %107, %108, %cst_106 {dimension_numbers = #tpu.dot_dimension_numbers<[1], [0], [0], [1], [0, 0, 1, 1], [], []>} : vector<2x1024xf32>, vector<1024x128xf32>, vector<2x128xf32> -> vector<2x128xf32>
    %c0_107 = arith.constant 0 : index
    %c0_108 = arith.constant 0 : index
    %110 = vector.load %arg11[%c0_107, %c0_108] : memref<1x128xf32, #tpu.memory_space<vmem>>, vector<1x128xf32>
    %111 = vector.broadcast %110 : vector<1x128xf32> to vector<2x128xf32>
    %112 = arith.addf %109, %111 : vector<2x128xf32>
    %113 = vector.extract_strided_slice %112 {offsets = [0, 0], sizes = [2, 1], strides = [1, 1]} : vector<2x128xf32> to vector<2x1xf32>
    %114 = vector.extract_strided_slice %112 {offsets = [0, 1], sizes = [2, 6], strides = [1, 1]} : vector<2x128xf32> to vector<2x6xf32>
    %115 = vector.broadcast %113 : vector<2x1xf32> to vector<2x6xf32>
    %116 = arith.addf %115, %114 : vector<2x6xf32>
    %cst_109 = arith.constant dense<0.000000e+00> : vector<2xf32>
    %117 = vector.multi_reduction <add>, %114, %cst_109 [1] : vector<2x6xf32> to vector<2xf32>
    %118 = vector.shape_cast %117 : vector<2xf32> to vector<2x1xf32>
    %cst_110 = arith.constant 0.166666672 : f32
    %119 = vector.broadcast %cst_110 : f32 to vector<2x1xf32>
    %120 = arith.mulf %118, %119 : vector<2x1xf32>
    %121 = vector.broadcast %120 : vector<2x1xf32> to vector<2x6xf32>
    %122 = arith.subf %116, %121 : vector<2x6xf32>
    %cst_111 = arith.constant 0.000000e+00 : f32
    %123 = vector.broadcast %cst_111 : f32 to vector<2x128xf32>
    %c0_112 = arith.constant 0 : index
    %c0_113 = arith.constant 0 : index
    %124 = vector.load %arg12[%c0_112, %c0_113] : memref<2x128xf32, #tpu.memory_space<vmem>>, vector<2x128xf32>
    tpu.vector_store %arg12[%c0_112, %c0_113], %123 {strides = array<i32>} : memref<2x128xf32, #tpu.memory_space<vmem>>, vector<2x128xf32>,
    %c0_114 = arith.constant 0 : index
    %c0_115 = arith.constant 0 : index
    %125 = vector.load %arg12[%c0_114, %c0_115] : memref<2x128xf32, #tpu.memory_space<vmem>>, vector<2x6xf32>
    tpu.vector_store %arg12[%c0_114, %c0_115], %122 {strides = array<i32>} : memref<2x128xf32, #tpu.memory_space<vmem>>, vector<2x6xf32>,
    return
  }
  func.func @transform_0(%arg0: i32) -> (i32, i32) {
    %c0_i32 = arith.constant 0 : i32
    %c0_i32_0 = arith.constant 0 : i32
    %c0_i32_1 = arith.constant 0 : i32
    return %c0_i32, %c0_i32_0 : i32, i32
  }
  func.func @transform_1(%arg0: i32) -> (i32, i32) {
    %c0_i32 = arith.constant 0 : i32
    %c0_i32_0 = arith.constant 0 : i32
    %c0_i32_1 = arith.constant 0 : i32
    return %c0_i32, %c0_i32_0 : i32, i32
  }
  func.func @transform_2(%arg0: i32) -> (i32, i32) {
    %c0_i32 = arith.constant 0 : i32
    %c0_i32_0 = arith.constant 0 : i32
    %c0_i32_1 = arith.constant 0 : i32
    return %c0_i32, %c0_i32_0 : i32, i32
  }
  func.func @transform_3(%arg0: i32) -> (i32, i32) {
    %c0_i32 = arith.constant 0 : i32
    %c0_i32_0 = arith.constant 0 : i32
    %c0_i32_1 = arith.constant 0 : i32
    return %c0_i32, %c0_i32_0 : i32, i32
  }
  func.func @transform_4(%arg0: i32) -> (i32, i32) {
    %c0_i32 = arith.constant 0 : i32
    %c0_i32_0 = arith.constant 0 : i32
    %c0_i32_1 = arith.constant 0 : i32
    return %c0_i32, %c0_i32_0 : i32, i32
  }
  func.func @transform_5(%arg0: i32) -> (i32, i32) {
    %c0_i32 = arith.constant 0 : i32
    %c0_i32_0 = arith.constant 0 : i32
    %c0_i32_1 = arith.constant 0 : i32
    return %c0_i32, %c0_i32_0 : i32, i32
  }
  func.func @transform_6(%arg0: i32) -> (i32, i32) {
    %c0_i32 = arith.constant 0 : i32
    %c0_i32_0 = arith.constant 0 : i32
    %c0_i32_1 = arith.constant 0 : i32
    return %c0_i32, %c0_i32_0 : i32, i32
  }
  func.func @transform_7(%arg0: i32) -> (i32, i32) {
    %c0_i32 = arith.constant 0 : i32
    %c0_i32_0 = arith.constant 0 : i32
    %c0_i32_1 = arith.constant 0 : i32
    return %c0_i32, %c0_i32_0 : i32, i32
  }
  func.func @transform_8(%arg0: i32) -> (i32, i32) {
    %c0_i32 = arith.constant 0 : i32
    %c0_i32_0 = arith.constant 0 : i32
    %c0_i32_1 = arith.constant 0 : i32
    return %c0_i32, %c0_i32_0 : i32, i32
  }
  func.func @transform_9(%arg0: i32) -> (i32, i32) {
    %c0_i32 = arith.constant 0 : i32
    %c0_i32_0 = arith.constant 0 : i32
    %c0_i32_1 = arith.constant 0 : i32
    return %c0_i32, %c0_i32_0 : i32, i32
  }
  func.func @transform_10(%arg0: i32) -> (i32, i32) {
    %c0_i32 = arith.constant 0 : i32
    %c0_i32_0 = arith.constant 0 : i32
    %c0_i32_1 = arith.constant 0 : i32
    return %c0_i32, %c0_i32_0 : i32, i32
  }
  func.func @transform_11(%arg0: i32) -> (i32, i32) {
    %c0_i32 = arith.constant 0 : i32
    %c0_i32_0 = arith.constant 0 : i32
    %c0_i32_1 = arith.constant 0 : i32
    return %c0_i32, %c0_i32_0 : i32, i32
  }
}

</mosaic_0001>

<bundles_post_ra>
// kernel: duel_ddqn_forward.1
= control target key start
LH: loop header
LB: loop body
LE: loop exit
PB: predicated region body
PF: predicated region fallthrough
CT: control target
= control target key end

     0   :  { %s5857_s0 = inlined_call_operand.vmem [shape: f32[128,256], index: 0, kind: input, shape index: {}]   ;;  %s5858_s1 = inlined_call_operand.vmem [shape: f32[256,32], index: 1, kind: input, shape index: {}]   ;;  %s5859_s2 = inlined_call_operand.vmem [shape: f32[1,32], index: 2, kind: input, shape index: {}]   ;;  %s5860_s3 = inlined_call_operand.vmem [shape: f32[512,64], index: 3, kind: input, shape index: {}]   ;;  %s5861_s4 = inlined_call_operand.vmem [shape: f32[1,64], index: 4, kind: input, shape index: {}]   ;;  %s5862_s5 = inlined_call_operand.vmem [shape: f32[576,64], index: 5, kind: input, shape index: {}]   ;;  %s5863_s6 = inlined_call_operand.vmem [shape: f32[1,64], index: 6, kind: input, shape index: {}]   ;;  %s5864_s7 = inlined_call_operand.vmem [shape: f32[64,1024], index: 7, kind: input, shape index: {}]   ;;  %s5865_s8 = inlined_call_operand.vmem [shape: f32[1,1024], index: 8, kind: input, shape index: {}]   ;;  %s5866_s9 = inlined_call_operand.vmem [shape: f32[1024,128], index: 9, kind: input, shape index: {}]   ;;  %s5867_s10 = inlined_call_operand.vmem [shape: f32[1,128], index: 10, kind: input, shape index: {}]   ;;  %s5868_s11 = inlined_call_operand.hbm [shape: f32[2,128], index: 11, kind: output, shape index: {}]  }
   0x1   :  { %v87_v0 = vld [vmem:[%s5858_s1 + $0x80] sm:$0xff]  ;;  %v88_v1 = vld [vmem:[%s5858_s1 + $0x88] sm:$0xff]  ;;  %v89_v5 = vld [vmem:[%s5858_s1 + $0x90] sm:$0xff] }
   0x2   :  { %v71_v2 = vld [vmem:[%s5858_s1] sm:$0xff]  ;;  %v3485_v3 = vpack.c.bf16 %v88_v1, %v87_v0  ;;  %v72_v4 = vld [vmem:[%s5858_s1 + $0x8] sm:$0xff]  ;;  %v90_v6 = vld [vmem:[%s5858_s1 + $0x98] sm:$0xff] }
   0x3   :  { %v3487_v7 = vpack.c.bf16 %v72_v4, %v71_v2  ;;  %v3489_v8 = vpack.c.bf16 %v90_v6, %v89_v5  ;;  %v73_v9 = vld [vmem:[%s5858_s1 + $0x10] sm:$0xff]  ;;  %v74_v10 = vld [vmem:[%s5858_s1 + $0x18] sm:$0xff]  ;;  %v91_v11 = vld [vmem:[%s5858_s1 + $0xa0] sm:$0xff] }
   0x4   :  { %3486 = vmatprep.subr.bf16.mxu0 %v3485_v3  ;;  %v92_v12 = vld [vmem:[%s5858_s1 + $0xa8] sm:$0xff]  ;;  %v3491_v13 = vpack.c.bf16 %v74_v10, %v73_v9  ;;  %v75_v15 = vld [vmem:[%s5858_s1 + $0x20] sm:$0xff]  ;;  %v93_v17 = vld [vmem:[%s5858_s1 + $0xb0] sm:$0xff] }
   0x5   :  { %3488 = vmatpush3.bf16.msra.mxu0 %v3487_v7  ;;  %v3493_v14 = vpack.c.bf16 %v92_v12, %v91_v11  ;;  %v76_v16 = vld [vmem:[%s5858_s1 + $0x28] sm:$0xff]  ;;  %v94_v18 = vld [vmem:[%s5858_s1 + $0xb8] sm:$0xff]  ;;  %v77_v21 = vld [vmem:[%s5858_s1 + $0x30] sm:$0xff] }
   0x6   :  { %3490 = vmatprep.subr.bf16.mxu0 %v3489_v8  ;;  %v3495_v19 = vpack.c.bf16 %v76_v16, %v75_v15  ;;  %v3497_v20 = vpack.c.bf16 %v94_v18, %v93_v17  ;;  %v78_v22 = vld [vmem:[%s5858_s1 + $0x38] sm:$0xff]  ;;  %v95_v23 = vld [vmem:[%s5858_s1 + $0xc0] sm:$0xff]  ;;  %v96_v24 = vld [vmem:[%s5858_s1 + $0xc8] sm:$0xff] }
   0x7   :  { %v40_v25 = vld [vmem:[%s5857_s0 + $0x8] sm:$0xff]  ;;  %v3499_v26 = vpack.c.bf16 %v78_v22, %v77_v21  ;;  %v3501_v27 = vpack.c.bf16 %v96_v24, %v95_v23  ;;  %v79_v28 = vld [vmem:[%s5858_s1 + $0x40] sm:$0xff]  ;;  %v97_v30 = vld [vmem:[%s5858_s1 + $0xd0] sm:$0xff] }
   0x8   :  { %174 = vmatprep.mubr.f32.mxu0 %v40_v25  ;;  %v80_v29 = vld [vmem:[%s5858_s1 + $0x48] sm:$0xff]  ;;  %v98_v31 = vld [vmem:[%s5858_s1 + $0xd8] sm:$0xff]  ;;  %v81_v34 = vld [vmem:[%s5858_s1 + $0x50] sm:$0xff] }
   0x9   :  { %3492 = vmatpush3.bf16.msra.mxu0 %v3491_v13  ;;  %v3503_v32 = vpack.c.bf16 %v80_v29, %v79_v28  ;;  %v3505_v33 = vpack.c.bf16 %v98_v31, %v97_v30  ;;  %v82_v35 = vld [vmem:[%s5858_s1 + $0x58] sm:$0xff]  ;;  %v99_v36 = vld [vmem:[%s5858_s1 + $0xe0] sm:$0xff]  ;;  %v100_v37 = vld [vmem:[%s5858_s1 + $0xe8] sm:$0xff] }
   0xa   :  { %3494 = vmatprep.subr.bf16.mxu0 %v3493_v14  ;;  %v3507_v38 = vpack.c.bf16 %v82_v35, %v81_v34  ;;  %v3509_v39 = vpack.c.bf16 %v100_v37, %v99_v36  ;;  %v83_v40 = vld [vmem:[%s5858_s1 + $0x60] sm:$0xff]  ;;  %v84_v41 = vld [vmem:[%s5858_s1 + $0x68] sm:$0xff] }
   0xd   :  { %3496 = vmatpush3.bf16.msra.mxu0 %v3495_v19 }
   0xe   :  { %3498 = vmatprep.subr.bf16.mxu0 %v3497_v20 }
  0x11   :  { %3500 = vmatpush3.bf16.msra.mxu0 %v3499_v26 }
  0x12   :  { %3502 = vmatprep.subr.bf16.mxu0 %v3501_v27 }
  0x15   :  { %3504 = vmatpush3.bf16.msra.mxu0 %v3503_v32 }
  0x16   :  { %3506 = vmatprep.subr.bf16.mxu0 %v3505_v33 }
  0x17   :  { %16 = vsyncpa [#allocation5], 0  ;;  %v101_v42 = vld [vmem:[%s5858_s1 + $0xf0] sm:$0xff]  ;;  %v102_v43 = vld [vmem:[%s5858_s1 + $0xf8] sm:$0xff]  ;;  %v3511_v44 = vpack.c.bf16 %v84_v41, %v83_v40  ;;  %v4160_v19 = vmov 0.0|0.0   ;;  %vm271_vm0 = vcmask 261120  }
  0x18   :  { %v3513_v45 = vpack.c.bf16 %v102_v43, %v101_v42  ;;  %v85_v46 = vld [vmem:[%s5858_s1 + $0x70] sm:$0xff]  ;;  %v86_v47 = vld [vmem:[%s5858_s1 + $0x78] sm:$0xff]  ;;  %v39_v49 = vld [vmem:[%s5857_s0] sm:$0xff]  ;;  %3517 = vmatprep.subr.bf16.mxu1 %v4160_v19  ;;  %s4161_s26 = smov 32   ;;  %s4162_s21 = smov 64   ;;  %vm4163_vm1 = vmmov 0  }
  0x19   :  { %3508 = vmatpush3.bf16.msra.mxu0 %v3507_v38  ;;  %v3515_v48 = vpack.c.bf16 %v86_v47, %v85_v46  ;;  %v42_v50 = vld [vmem:[%s5857_s0 + $0x18] sm:$0xff]  ;;  %v41_v51 = vld [vmem:[%s5857_s0 + $0x10] sm:$0xff]  ;;  %v44_v52 = vld [vmem:[%s5857_s0 + $0x28] sm:$0xff]  ;;  %s4165_s27 = smov 96   ;;  %vm282_vm2 = vcmask 523520   ;;  %vm293_vm3 = vcmask 785920  }
  0x1a   :  { %3510 = vmatprep.subr.bf16.mxu0 %v3509_v39  ;;  %v43_v53 = vld [vmem:[%s5857_s0 + $0x20] sm:$0xff]  ;;  %v46_v54 = vld [vmem:[%s5857_s0 + $0x38] sm:$0xff]  ;;  %v45_v55 = vld [vmem:[%s5857_s0 + $0x30] sm:$0xff]  ;;  %vm304_vm4 = vcmask 1048320   ;;  %vm748_vm5 = vcmask 523264   ;;  %vm704_vm6 = vcmask 521216  }
  0x1b   :  { %v48_v56 = vld [vmem:[%s5857_s0 + $0x48] sm:$0xff]  ;;  %v47_v57 = vld [vmem:[%s5857_s0 + $0x40] sm:$0xff]  ;;  %v50_v58 = vld [vmem:[%s5857_s0 + $0x58] sm:$0xff]  ;;  %vm1103_vm7 = vcmask 1046016   ;;  %vm2604_vm8 = vcmask 41984  }
  0x1c   :  { %v49_v59 = vld [vmem:[%s5857_s0 + $0x50] sm:$0xff]  ;;  %v52_v60 = vld [vmem:[%s5857_s0 + $0x68] sm:$0xff]  ;;  %v51_v61 = vld [vmem:[%s5857_s0 + $0x60] sm:$0xff] }
  0x1d   :  { %3512 = vmatpush3.bf16.msra.mxu0 %v3511_v44  ;;  %v54_v62 = vld [vmem:[%s5857_s0 + $0x78] sm:$0xff]  ;;  %v53_v63 = vld [vmem:[%s5857_s0 + $0x70] sm:$0xff]  ;;  %v56_v0 = vld [vmem:[%s5857_s0 + $0x88] sm:$0xff] }
  0x1e   :  { %3514 = vmatprep.subr.bf16.mxu0 %v3513_v45  ;;  %v55_v1 = vld [vmem:[%s5857_s0 + $0x80] sm:$0xff]  ;;  %v58_v2 = vld [vmem:[%s5857_s0 + $0x98] sm:$0xff]  ;;  %v57_v3 = vld [vmem:[%s5857_s0 + $0x90] sm:$0xff] }
  0x1f   :  { %v60_v4 = vld [vmem:[%s5857_s0 + $0xa8] sm:$0xff]  ;;  %v59_v5 = vld [vmem:[%s5857_s0 + $0xa0] sm:$0xff]  ;;  %v62_v6 = vld [vmem:[%s5857_s0 + $0xb8] sm:$0xff] }
  0x20   :  { %v61_v7 = vld [vmem:[%s5857_s0 + $0xb0] sm:$0xff]  ;;  %v64_v8 = vld [vmem:[%s5857_s0 + $0xc8] sm:$0xff]  ;;  %v63_v9 = vld [vmem:[%s5857_s0 + $0xc0] sm:$0xff] }
  0x21   :  { %3516 = vmatpush3.bf16.msra.mxu0 %v3515_v48  ;;  %v66_v10 = vld [vmem:[%s5857_s0 + $0xd8] sm:$0xff]  ;;  %v65_v11 = vld [vmem:[%s5857_s0 + $0xd0] sm:$0xff]  ;;  %v68_v12 = vld [vmem:[%s5857_s0 + $0xe8] sm:$0xff] }
  0x22   :  { %v67_v13 = vld [vmem:[%s5857_s0 + $0xe0] sm:$0xff]  ;;  %v70_v14 = vld [vmem:[%s5857_s0 + $0xf8] sm:$0xff]  ;;  %v69_v15 = vld [vmem:[%s5857_s0 + $0xf0] sm:$0xff]  ;;  %3565 = vmatprep.subr.bf16.mxu0 %v4160_v19 }
  0x23   :  { %v358_v16 = vld [vmem:[%s5860_s3 + $0x80] sm:$0xff]  ;;  %v359_v17 = vld [vmem:[%s5860_s3 + $0x88] sm:$0xff]  ;;  %v360_v18 = vld [vmem:[%s5860_s3 + $0x90] sm:$0xff] }
  0x24   :  { %175 = vmatmul.mubr.f32.vlgmr.msra.gmra.mrb[0].mxu0 %v39_v49  ;;  %v4431_v20 = vpack.c.bf16 %v359_v17, %v358_v16  ;;  %v361_v21 = vld [vmem:[%s5860_s3 + $0x98] sm:$0xff]  ;;  %v4446_v24 = vld [vmem:[%s5859_s2] ss:$0 sm:$0xff]  ;;  %v363_v30 = vld [vmem:[%s5860_s3 + $0xa8] sm:$0xff] }
  0x25   :  { %179 = vmatprep.mubr.f32.mxu0 %v42_v50  ;;  %v4438_v22 = vpack.c.bf16 %v361_v21, %v360_v18  ;;  %v362_v29 = vld [vmem:[%s5860_s3 + $0xa0] sm:$0xff]  ;;  %v516_v36 = vld [vmem:[%s5860_s3 + $0x108] sm:$0xff]  ;;  %v364_v37 = vld [vmem:[%s5860_s3 + $0xb0] sm:$0xff] }
  0x26   :  { %3519 = vmatpush3.bf16.msra.mxu1 %v4431_v20  ;;  %v4455_v32 = vpack.c.bf16 %v363_v30, %v362_v29  ;;  %v515_v35 = vld [vmem:[%s5860_s3 + $0x100] sm:$0xff]  ;;  %v365_v41 = vld [vmem:[%s5860_s3 + $0xb8] sm:$0xff]  ;;  %v517_v42 = vld [vmem:[%s5860_s3 + $0x110] sm:$0xff] }
  0x27   :  { %3520 = vmatprep.subr.bf16.mxu1 %v4160_v19  ;;  %v4470_v40 = vpack.c.bf16 %v516_v36, %v515_v35  ;;  %v518_v43 = vld [vmem:[%s5860_s3 + $0x118] sm:$0xff]  ;;  %v4481_v45 = vpack.c.bf16 %v365_v41, %v364_v37  ;;  %v366_v50 = vld [vmem:[%s5860_s3 + $0xc0] sm:$0xff]  ;;  %v372_v16 = vld [vmem:[%s5860_s3 + $0xf0] sm:$0xff] }
  0x28   :  { %180 = vmatmul.mubr.f32.gmra.mrb[2].mxu0 %v41_v51  ;;  %v4486_v48 = vpack.c.bf16 %v518_v43, %v517_v42  ;;  %v367_v51 = vld [vmem:[%s5860_s3 + $0xc8] sm:$0xff]  ;;  %v373_v17 = vld [vmem:[%s5860_s3 + $0xf8] sm:$0xff] }
  0x29   :  { %184 = vmatprep.mubr.f32.mxu0 %v44_v52  ;;  %3567 = vmatpush3.bf16.msra.mxu0 %v4470_v40  ;;  %v4561_v21 = vpack.c.bf16 %v373_v17, %v372_v16 }
  0x2a   :  { %3522 = vmatpush3.bf16.msra.mxu1 %v4438_v22  ;;  %3568 = vmatprep.subr.bf16.mxu0 %v4160_v19 }
  0x2b   :  { %3523 = vmatprep.subr.bf16.mxu1 %v4160_v19 }
  0x2c   :  { %185 = vmatmul.mubr.f32.gmra.mrb[4].mxu0 %v43_v53  ;;  %v4498_v53 = vpack.c.bf16 %v367_v51, %v366_v50  ;;  %v529_v51 = vld [vmem:[%s5860_s3 + $0x170] sm:$0xff] }
  0x2d   :  { %189 = vmatprep.mubr.f32.mxu0 %v46_v54  ;;  %3570 = vmatpush3.bf16.msra.mxu0 %v4486_v48 }
  0x2e   :  { %3525 = vmatpush3.bf16.msra.mxu1 %v4455_v32  ;;  %3571 = vmatprep.subr.bf16.mxu0 %v4160_v19 }
  0x2f   :  { %3526 = vmatprep.subr.bf16.mxu1 %v4160_v19 }
  0x30   :  { %190 = vmatmul.mubr.f32.gmra.mrb[6].mxu0 %v45_v55  ;;  %v519_v55 = vld [vmem:[%s5860_s3 + $0x120] sm:$0xff] }
  0x31   :  { %194 = vmatprep.mubr.f32.mxu0 %v48_v56  ;;  %v520_v56 = vld [vmem:[%s5860_s3 + $0x128] sm:$0xff] }
  0x32   :  { %3528 = vmatpush3.bf16.msra.mxu1 %v4481_v45 }
  0x33   :  { %3529 = vmatprep.subr.bf16.mxu1 %v4160_v19 }
  0x34   :  { %195 = vmatmul.mubr.f32.gmra.mrb[8].mxu0 %v47_v57 }
  0x35   :  { %199 = vmatprep.mubr.f32.mxu0 %v50_v58 }
  0x36   :  { %3531 = vmatpush3.bf16.msra.mxu1 %v4498_v53 }
  0x37   :  { %3532 = vmatprep.subr.bf16.mxu1 %v4160_v19 }
  0x38   :  { %200 = vmatmul.mubr.f32.gmra.mrb[10].mxu0 %v49_v59  ;;  %v4511_v59 = vpack.c.bf16 %v520_v56, %v519_v55 }
  0x39   :  { %204 = vmatprep.mubr.f32.mxu0 %v52_v60  ;;  %v368_v60 = vld [vmem:[%s5860_s3 + $0xd0] sm:$0xff] }
  0x3a   :  { %3573 = vmatpush3.bf16.msra.mxu0 %v4511_v59 }
  0x3b   :  { %3574 = vmatprep.subr.bf16.mxu0 %v4160_v19 }
  0x3c   :  { %205 = vmatmul.mubr.f32.gmra.mrb[12].mxu0 %v51_v61  ;;  %v369_v61 = vld [vmem:[%s5860_s3 + $0xd8] sm:$0xff] }
  0x3d   :  { %209 = vmatprep.mubr.f32.mxu0 %v54_v62 }
  0x40   :  { %210 = vmatmul.mubr.f32.gmra.mrb[14].mxu0 %v53_v63  ;;  %v4519_v63 = vpack.c.bf16 %v369_v61, %v368_v60 }
  0x41   :  { %214 = vmatprep.mubr.f32.mxu0 %v56_v0 }
  0x42   :  { %3534 = vmatpush3.bf16.msra.mxu1 %v4519_v63 }
  0x43   :  { %3535 = vmatprep.subr.bf16.mxu1 %v4160_v19 }
  0x44   :  { %215 = vmatmul.mubr.f32.gmra.mrb[16].mxu0 %v55_v1 }
  0x45   :  { %219 = vmatprep.mubr.f32.mxu0 %v58_v2  ;;  %v521_v2 = vld [vmem:[%s5860_s3 + $0x130] sm:$0xff] }
  0x48   :  { %220 = vmatmul.mubr.f32.gmra.mrb[18].mxu0 %v57_v3  ;;  %v522_v3 = vld [vmem:[%s5860_s3 + $0x138] sm:$0xff] }
  0x49   :  { %224 = vmatprep.mubr.f32.mxu0 %v60_v4  ;;  %v4530_v4 = vpack.c.bf16 %v522_v3, %v521_v2 }
  0x4b   :  { %3576 = vmatpush3.bf16.msra.mxu0 %v4530_v4 }
  0x4c   :  { %225 = vmatmul.mubr.f32.gmra.mrb[20].mxu0 %v59_v5  ;;  %3577 = vmatprep.subr.bf16.mxu0 %v4160_v19 }
  0x4d   :  { %229 = vmatprep.mubr.f32.mxu0 %v62_v6  ;;  %v370_v6 = vld [vmem:[%s5860_s3 + $0xe0] sm:$0xff] }
  0x50   :  { %230 = vmatmul.mubr.f32.gmra.mrb[22].mxu0 %v61_v7  ;;  %v371_v7 = vld [vmem:[%s5860_s3 + $0xe8] sm:$0xff] }
  0x51   :  { %234 = vmatprep.mubr.f32.mxu0 %v64_v8 }
  0x54   :  { %235 = vmatmul.mubr.f32.gmra.mrb[24].mxu0 %v63_v9  ;;  %v4540_v9 = vpack.c.bf16 %v371_v7, %v370_v6 }
  0x55   :  { %239 = vmatprep.mubr.f32.mxu0 %v66_v10 }
  0x56   :  { %3537 = vmatpush3.bf16.msra.mxu1 %v4540_v9 }
  0x57   :  { %3538 = vmatprep.subr.bf16.mxu1 %v4160_v19 }
  0x58   :  { %240 = vmatmul.mubr.f32.gmra.mrb[26].mxu0 %v65_v11  ;;  %v523_v11 = vld [vmem:[%s5860_s3 + $0x140] sm:$0xff] }
  0x59   :  { %244 = vmatprep.mubr.f32.mxu0 %v68_v12  ;;  %v524_v12 = vld [vmem:[%s5860_s3 + $0x148] sm:$0xff] }
  0x5a   :  { %3540 = vmatpush3.bf16.msra.mxu1 %v4561_v21 }
  0x5b   :  { %3541 = vmatprep.subr.bf16.mxu1 %v4160_v19 }
  0x5c   :  { %245 = vmatmul.mubr.f32.gmra.mrb[28].mxu0 %v67_v13 }
  0x5d   :  { %249 = vmatprep.mubr.f32.mxu0 %v70_v14 }
  0x60   :  { %250 = vmatmul.mubr.f32.gmra.mrb[30].mxu0 %v69_v15  ;;  %v4553_v15 = vpack.c.bf16 %v524_v12, %v523_v11 }
  0x62   :  { %3579 = vmatpush3.bf16.msra.mxu0 %v4553_v15 }
  0x63   :  { %3580 = vmatprep.subr.bf16.mxu0 %v4160_v19 }
  0xf7   :  { %v2673_v23 = vpop.f32.mrb[0].mxu0 }
  0xf8   :  { %v2674_v25 = vpop.f32.mrb[1].mxu0 }
  0xf9   :  { %v2675_v26 = vadd.f32 %v2674_v25, %v2673_v23 }
  0xfb   :  { %v177_v27 = vadd.f32 %v2675_v26, %v4446_v24  ;;  %v2676_v28 = vpop.f32.mrb[2].mxu0 }
  0xfc   :  { %v2677_v31 = vpop.f32.mrb[3].mxu0 }
  0xfd   :  { %v255_v33 = vmax.f32 %v177_v27, 0.0  ;;  %v2678_v34 = vadd.f32 %v2677_v31, %v2676_v28  ;;  %v525_v27 = vld [vmem:[%s5860_s3 + $0x150] sm:$0xff]  ;;  %v526_v28 = vld [vmem:[%s5860_s3 + $0x158] sm:$0xff] }
  0xfe   :  { %v4575_v30 = vpack.c.bf16 %v526_v28, %v525_v27 }
  0xff   :  { %v182_v38 = vadd.f32 %v2678_v34, %v4446_v24  ;;  %v2679_v39 = vpop.f32.mrb[4].mxu0  ;;  %272 = vst.msk [vmem:[#allocation2] sm:$0xff] %vm271_vm0, %v255_v33  ;;  %v4164_v33 = vmov 0.0  }
 0x100   :  { %v2680_v44 = vpop.f32.mrb[5].mxu0  ;;  %3097 = vmatprep.mubr.msk.f32.mxu1 %vm4163_vm1, %v4164_v33  ;;  %2610 = vst [vmem:[#allocation4] sm:$0x3] %v4164_v33  ;;  %3167 = vmatprep.mubr.msk.f32.mxu0 %vm4163_vm1, %v4164_v33 }
 0x101   :  { %v256_v46 = vmax.f32 %v182_v38, 0.0  ;;  %v4483_v47 = vadd.f32 %v2680_v44, %v2679_v39  ;;  %3582 = vmatpush3.bf16.msra.mxu0 %v4575_v30  ;;  %v527_v38 = vld [vmem:[%s5860_s3 + $0x160] sm:$0xff]  ;;  %v528_v39 = vld [vmem:[%s5860_s3 + $0x168] sm:$0xff] }
 0x102   :  { %3583 = vmatprep.subr.bf16.mxu0 %v4160_v19  ;;  %v4592_v42 = vpack.c.bf16 %v528_v39, %v527_v38 }
 0x103   :  { %v2682_v49 = vpop.f32.mrb[6].mxu0  ;;  %273 = vst.msk [vmem:[#allocation2 + $0x10] sm:$0xff] %vm271_vm0, %v256_v46  ;;  %v187_v43 = vadd.f32 %v4483_v47, %v4446_v24  ;;  %v530_v47 = vld [vmem:[%s5860_s3 + $0x178] sm:$0xff] }
 0x104   :  { %v2683_v52 = vpop.f32.mrb[7].mxu0 }
 0x105   :  { %v2684_v54 = vadd.f32 %v2683_v52, %v2682_v49  ;;  %3585 = vmatpush3.bf16.msra.mxu0 %v4592_v42  ;;  %v257_v55 = vmax.f32 %v187_v43, 0.0 }
 0x106   :  { %3586 = vmatprep.subr.bf16.mxu0 %v4160_v19 }
 0x107   :  { %v2685_v57 = vpop.f32.mrb[8].mxu0  ;;  %v192_v58 = vadd.f32 %v2684_v54, %v4446_v24  ;;  %v4606_v54 = vpack.c.bf16 %v530_v47, %v529_v51 }
 0x108   :  { %v2686_v62 = vpop.f32.mrb[9].mxu0 }
 0x109   :  { %v2687_v0 = vadd.f32 %v2686_v62, %v2685_v57  ;;  %v258_v1 = vmax.f32 %v192_v58, 0.0  ;;  %3588 = vmatpush3.bf16.msra.mxu0 %v4606_v54 }
 0x10a   :  { %3613 = vmatprep.subr.bf16.mxu0 %v4160_v19 }
 0x10b   :  { %v2688_v5 = vpop.f32.mrb[10].mxu0  ;;  %278 = vrot.lane.b32.xlu0 %v258_v1, %s4161_s26  ;;  %v197_v23 = vadd.f32 %v2687_v0, %v4446_v24 }
 0x10c   :  { %v2689_v8 = vpop.f32.mrb[11].mxu0 }
 0x10d   :  { %v2690_v10 = vadd.f32 %v2689_v8, %v2688_v5  ;;  %v259_v34 = vmax.f32 %v197_v23, 0.0 }
 0x10f   :  { %v202_v13 = vadd.f32 %v2690_v10, %v4446_v24  ;;  %v2691_v14 = vpop.f32.mrb[12].mxu0 }
 0x110   :  { %v2692_v18 = vpop.f32.mrb[13].mxu0 }
 0x111   :  { %v260_v25 = vmax.f32 %v202_v13, 0.0  ;;  %v2693_v26 = vadd.f32 %v2692_v18, %v2691_v14 }
 0x113   :  { %v2694_v29 = vpop.f32.mrb[14].mxu0  ;;  %289 = vrot.lane.b32.xlu0 %v260_v25, %s4162_s21  ;;  %v207_v56 = vadd.f32 %v2693_v26, %v4446_v24 }
 0x114   :  { %v2695_v31 = vpop.f32.mrb[15].mxu0 }
 0x115   :  { %v2696_v35 = vadd.f32 %v2695_v31, %v2694_v29  ;;  %v261_v0 = vmax.f32 %v207_v56, 0.0 }
 0x117   :  { %v2697_v36 = vpop.f32.mrb[16].mxu0  ;;  %287 = vrot.lane.b32.xlu0 %v259_v34, %s4162_s21  ;;  %v212_v37 = vadd.f32 %v2696_v35, %v4446_v24 }
 0x118   :  { %v2698_v41 = vpop.f32.mrb[17].mxu0 }
 0x119   :  { %v2699_v44 = vadd.f32 %v2698_v41, %v2697_v36  ;;  %v262_v46 = vmax.f32 %v212_v37, 0.0 }
 0x11b   :  { %v217_v49 = vadd.f32 %v2699_v44, %v4446_v24  ;;  %v2700_v50 = vpop.f32.mrb[18].mxu0  ;;  %300 = vrot.lane.b32.xlu1 %v262_v46, %s4165_s27 }
 0x11c   :  { %v2701_v52 = vpop.f32.mrb[19].mxu0 }
 0x11d   :  { %v263_v57 = vmax.f32 %v217_v49, 0.0  ;;  %v2702_v58 = vadd.f32 %v2701_v52, %v2700_v50  ;;  %v342_v49 = vld [vmem:[%s5860_s3 + $0x8] sm:$0xff]  ;;  %v343_v52 = vld [vmem:[%s5860_s3 + $0x10] sm:$0xff] }
 0x11f   :  { %v222_v60 = vadd.f32 %v2702_v58, %v4446_v24  ;;  %v2703_v61 = vpop.f32.mrb[20].mxu0  ;;  %276 = vrot.lane.b32.xlu1 %v257_v55, %s4161_s26  ;;  %307 = vst.msk [vmem:[#allocation2 + $0x8] sm:$0xff] %vm271_vm0, %v263_v57  ;;  %v344_v55 = vld [vmem:[%s5860_s3 + $0x18] sm:$0xff] }
 0x120   :  { %v2704_v62 = vpop.f32.mrb[21].mxu0  ;;  %v4649_v58 = vpack.c.bf16 %v344_v55, %v343_v52 }
 0x121   :  { %v264_v1 = vmax.f32 %v222_v60, 0.0  ;;  %v2705_v2 = vadd.f32 %v2704_v62, %v2703_v61  ;;  %v345_v60 = vld [vmem:[%s5860_s3 + $0x20] sm:$0xff]  ;;  %v346_v61 = vld [vmem:[%s5860_s3 + $0x28] sm:$0xff] }
 0x123   :  { %v227_v3 = vadd.f32 %v2705_v2, %v4446_v24  ;;  %v2706_v5 = vpop.f32.mrb[22].mxu0  ;;  %298 = vrot.lane.b32.xlu1 %v261_v0, %s4165_s27  ;;  %308 = vst.msk [vmem:[#allocation2 + $0x18] sm:$0xff] %vm271_vm0, %v264_v1  ;;  %v4662_v0 = vpack.c.bf16 %v346_v61, %v345_v60  ;;  %v347_v1 = vld [vmem:[%s5860_s3 + $0x30] sm:$0xff]  ;;  %v348_v2 = vld [vmem:[%s5860_s3 + $0x38] sm:$0xff] }
 0x124   :  { %v2707_v6 = vpop.f32.mrb[23].mxu0 }
 0x125   :  { %v265_v7 = vmax.f32 %v227_v3, 0.0  ;;  %v2708_v8 = vadd.f32 %v2707_v6, %v2706_v5 }
 0x127   :  { %v232_v10 = vadd.f32 %v2708_v8, %v4446_v24  ;;  %v2709_v11 = vpop.f32.mrb[24].mxu0  ;;  %311 = vrot.lane.b32.xlu0 %v265_v7, %s4161_s26  ;;  %v4673_v7 = vpack.c.bf16 %v348_v2, %v347_v1  ;;  %v349_v8 = vld [vmem:[%s5860_s3 + $0x40] sm:$0xff] }
 0x128   :  { %v2710_v12 = vpop.f32.mrb[25].mxu0 }
 0x129   :  { %v266_v13 = vmax.f32 %v232_v10, 0.0  ;;  %v2711_v14 = vadd.f32 %v2710_v12, %v2709_v11  ;;  %v350_v10 = vld [vmem:[%s5860_s3 + $0x48] sm:$0xff] }
 0x12a   :  { %v4688_v12 = vpack.c.bf16 %v350_v10, %v349_v8  ;;  %v613_v8 = vld [vmem:[%s5860_s3 + $0x1b8] sm:$0xff] }
 0x12b   :  { %v237_v16 = vadd.f32 %v2711_v14, %v4446_v24  ;;  %v2712_v17 = vpop.f32.mrb[26].mxu0  ;;  %313 = vrot.lane.b32.xlu0 %v266_v13, %s4161_s26  ;;  %v351_v13 = vld [vmem:[%s5860_s3 + $0x50] sm:$0xff]  ;;  %v352_v14 = vld [vmem:[%s5860_s3 + $0x58] sm:$0xff] }
 0x12c   :  { %v2713_v18 = vpop.f32.mrb[27].mxu0 }
 0x12d   :  { %v267_v23 = vmax.f32 %v237_v16, 0.0  ;;  %v2714_v25 = vadd.f32 %v2713_v18, %v2712_v17  ;;  %v4701_v17 = vpack.c.bf16 %v352_v14, %v351_v13  ;;  %v353_v18 = vld [vmem:[%s5860_s3 + $0x60] sm:$0xff]  ;;  %v615_v14 = vld [vmem:[%s5860_s3 + $0x1c8] sm:$0xff] }
 0x12e   :  { %v614_v13 = vld [vmem:[%s5860_s3 + $0x1c0] sm:$0xff] }
 0x12f   :  { %v242_v26 = vadd.f32 %v2714_v25, %v4446_v24  ;;  %v2715_v27 = vpop.f32.mrb[28].mxu0  ;;  %321 = vrot.lane.b32.xlu0 %v267_v23, %s4162_s21  ;;  %v354_v23 = vld [vmem:[%s5860_s3 + $0x68] sm:$0xff] }
 0x130   :  { %v2716_v28 = vpop.f32.mrb[29].mxu0  ;;  %v4713_v25 = vpack.c.bf16 %v354_v23, %v353_v18  ;;  %v616_v18 = vld [vmem:[%s5860_s3 + $0x1d0] sm:$0xff]  ;;  %v617_v23 = vld [vmem:[%s5860_s3 + $0x1d8] sm:$0xff] }
 0x131   :  { %v268_v29 = vmax.f32 %v242_v26, 0.0  ;;  %v2717_v31 = vadd.f32 %v2716_v28, %v2715_v27  ;;  %v355_v26 = vld [vmem:[%s5860_s3 + $0x70] sm:$0xff]  ;;  %v356_v27 = vld [vmem:[%s5860_s3 + $0x78] sm:$0xff] }
 0x133   :  { %v247_v34 = vadd.f32 %v2717_v31, %v4446_v24  ;;  %v2718_v35 = vpop.f32.mrb[30].mxu0  ;;  %323 = vrot.lane.b32.xlu1 %v268_v29, %s4162_s21  ;;  %v4726_v29 = vpack.c.bf16 %v356_v27, %v355_v26  ;;  %v606_v31 = vld [vmem:[%s5860_s3 + $0x180] sm:$0xff]  ;;  %v4801_v26 = vpack.c.bf16 %v617_v23, %v616_v18  ;;  %v1497_v18 = vld [vmem:[%s5862_s5 + $0xe8] sm:$0xff] }
 0x134   :  { %v2719_v36 = vpop.f32.mrb[31].mxu0  ;;  %v618_v27 = vld [vmem:[%s5860_s3 + $0x1e0] sm:$0xff] }
 0x135   :  { %v2720_v37 = vadd.f32 %v2719_v36, %v2718_v35  ;;  %v269_v41 = vmax.f32 %v247_v34, 0.0  ;;  %v607_v34 = vld [vmem:[%s5860_s3 + $0x188] sm:$0xff] }
 0x136   :  { %v4739_v36 = vpack.c.bf16 %v607_v34, %v606_v31  ;;  %v620_v34 = vld [vmem:[%s5860_s3 + $0x1f0] sm:$0xff] }
 0x137   :  { %v252_v38 = vadd.f32 %v2720_v37, %v4446_v24  ;;  %v341_v24 = vld [vmem:[%s5860_s3] sm:$0xff]  ;;  %v608_v37 = vld [vmem:[%s5860_s3 + $0x190] sm:$0xff] }
 0x138   :  { %v4639_v47 = vpack.c.bf16 %v342_v49, %v341_v24 }
 0x139   :  { %v270_v39 = vmax.f32 %v252_v38, 0.0  ;;  %v609_v38 = vld [vmem:[%s5860_s3 + $0x198] sm:$0xff] }
 0x13b   :  { %333 = vrot.lane.b32.xlu1 %v270_v39, %s4165_s27 }
 0x13f   :  { %331 = vrot.lane.b32.xlu1 %v269_v41, %s4165_s27 }
 0x17d   :  { %v279_v43 = vpop.permute.xlu0 %278 }
 0x17e   :  { %284 = vst.msk [vmem:[#allocation2 + $0x10] sm:$0xff] %vm282_vm2, %v279_v43 }
 0x185   :  { %v290_v44 = vpop.permute.xlu0 %289 }
 0x186   :  { %295 = vst.msk [vmem:[#allocation2 + $0x10] sm:$0xff] %vm293_vm3, %v290_v44 }
 0x189   :  { %v288_v51 = vpop.permute.xlu0 %287 }
 0x18d   :  { %v301_v46 = vpop.permute.xlu1 %300 }
 0x18e   :  { %306 = vst.msk [vmem:[#allocation2 + $0x10] sm:$0xff] %vm304_vm4, %v301_v46  ;;  %v4751_v46 = vpack.c.bf16 %v609_v38, %v608_v37 }
 0x191   :  { %v277_v50 = vpop.permute.xlu1 %276 }
 0x192   :  { %283 = vst.msk [vmem:[#allocation2] sm:$0xff] %vm282_vm2, %v277_v50  ;;  %v610_v50 = vld [vmem:[%s5860_s3 + $0x1a0] sm:$0xff] }
 0x193   :  { %294 = vst.msk [vmem:[#allocation2] sm:$0xff] %vm293_vm3, %v288_v51  ;;  %v611_v51 = vld [vmem:[%s5860_s3 + $0x1a8] sm:$0xff] }
 0x194   :  { %v4766_v2 = vpack.c.bf16 %v611_v51, %v610_v50 }
 0x195   :  { %v299_v56 = vpop.permute.xlu1 %298  ;;  %v357_v57 = vld [vmem:[#allocation2 + $0x10] sm:$0x3f] }
 0x196   :  { %305 = vst.msk [vmem:[#allocation2] sm:$0xff] %vm304_vm4, %v299_v56  ;;  %3098 = vmatmul.mubr.f32.vlgmr.msra.gmra.mrb[0].mxu1 %v357_v57  ;;  %v724_v41 = vld [vmem:[#allocation2 + $0x10] sm:$0x3f] }
 0x197   :  { %3543 = vmatpush3.bf16.msra.mxu1 %v4639_v47  ;;  %3132 = vmatprep.mubr.msk.f32.mxu1 %vm4163_vm1, %v4164_v33  ;;  %v998_v52 = vld [vmem:[#allocation2 + $0x10] sm:$0xfc] }
 0x198   :  { %3544 = vmatprep.subr.bf16.mxu1 %v4160_v19  ;;  %v605_v38 = vld [vmem:[#allocation2 + $0x10] sm:$0xfc] }
 0x199   :  { %v312_v62 = vpop.permute.xlu0 %311 }
 0x19a   :  { %317 = vst.msk [vmem:[#allocation2 + $0x8] sm:$0xff] %vm282_vm2, %v312_v62 }
 0x19b   :  { %3546 = vmatpush3.bf16.msra.mxu1 %v4649_v58 }
 0x19c   :  { %3547 = vmatprep.subr.bf16.mxu1 %v4160_v19 }
 0x19d   :  { %v314_v3 = vpop.permute.xlu0 %313  ;;  %v514_v5 = vld [vmem:[#allocation2] sm:$0xfc] }
 0x19e   :  { %318 = vst.msk [vmem:[#allocation2 + $0x18] sm:$0xff] %vm282_vm2, %v314_v3  ;;  %v532_v6 = vrot.slane %v514_v5, 2  ;;  %v340_v39 = vld [vmem:[#allocation2] sm:$0x3f]  ;;  %v1018_v5 = vrot.slane %v998_v52, 2 }
 0x19f   :  { %3549 = vmatpush3.bf16.msra.mxu1 %v4662_v0  ;;  %v899_v24 = vld [vmem:[#allocation2] sm:$0xfc] }
 0x1a0   :  { %3168 = vmatmul.mubr.f32.vlgmr.msra.gmra.mrb[32].mxu0 %v532_v6  ;;  %3550 = vmatprep.subr.bf16.mxu1 %v4160_v19  ;;  %v706_v55 = vld [vmem:[#allocation2] sm:$0x3f]  ;;  %v919_v61 = vrot.slane %v899_v24, 2  ;;  %v612_v6 = vld [vmem:[%s5860_s3 + $0x1b0] sm:$0xff] }
 0x1a1   :  { %v322_v11 = vpop.permute.xlu0 %321  ;;  %3615 = vmatpush3.bf16.msra.mxu0 %v4431_v20  ;;  %3237 = vmatprep.mubr.msk.f32.mxu0 %vm4163_vm1, %v4164_v33 }
 0x1a2   :  { %327 = vst.msk [vmem:[#allocation2 + $0x8] sm:$0xff] %vm293_vm3, %v322_v11  ;;  %3616 = vmatprep.subr.bf16.mxu0 %v4160_v19  ;;  %v4780_v11 = vpack.c.bf16 %v613_v8, %v612_v6  ;;  %v1494_v6 = vld [vmem:[%s5862_s5 + $0xd0] sm:$0xff]  ;;  %v1495_v8 = vld [vmem:[%s5862_s5 + $0xd8] sm:$0xff] }
 0x1a3   :  { %3552 = vmatpush3.bf16.msra.mxu1 %v4673_v7 }
 0x1a4   :  { %3553 = vmatprep.subr.bf16.mxu1 %v4160_v19 }
 0x1a5   :  { %v324_v16 = vpop.permute.xlu1 %323  ;;  %3618 = vmatpush3.bf16.msra.mxu0 %v4438_v22 }
 0x1a6   :  { %328 = vst.msk [vmem:[#allocation2 + $0x18] sm:$0xff] %vm293_vm3, %v324_v16  ;;  %3619 = vmatprep.subr.bf16.mxu0 %v4160_v19  ;;  %v4791_v16 = vpack.c.bf16 %v615_v14, %v614_v13  ;;  %v1470_v13 = vld [vmem:[%s5862_s5 + $0x20] sm:$0xff]  ;;  %v1471_v14 = vld [vmem:[%s5862_s5 + $0x28] sm:$0xff] }
 0x1a7   :  { %3555 = vmatpush3.bf16.msra.mxu1 %v4688_v12  ;;  %v3848_v23 = vpack.c.bf16 %v1471_v14, %v1470_v13  ;;  %v1514_v13 = vld [vmem:[%s5862_s5 + $0x170] sm:$0xff] }
 0x1a8   :  { %3556 = vmatprep.subr.bf16.mxu1 %v4160_v19 }
 0x1a9   :  { %3621 = vmatpush3.bf16.msra.mxu0 %v4455_v32 }
 0x1aa   :  { %3622 = vmatprep.subr.bf16.mxu0 %v4160_v19 }
 0x1ab   :  { %3558 = vmatpush3.bf16.msra.mxu1 %v4701_v17 }
 0x1ac   :  { %3559 = vmatprep.subr.bf16.mxu1 %v4160_v19 }
 0x1ad   :  { %v334_v28 = vpop.permute.xlu1 %333  ;;  %3624 = vmatpush3.bf16.msra.mxu0 %v4481_v45 }
 0x1ae   :  { %338 = vst.msk [vmem:[#allocation2 + $0x18] sm:$0xff] %vm304_vm4, %v334_v28  ;;  %3625 = vmatprep.subr.bf16.mxu0 %v4160_v19  ;;  %v619_v28 = vld [vmem:[%s5860_s3 + $0x1e8] sm:$0xff] }
 0x1af   :  { %3561 = vmatpush3.bf16.msra.mxu1 %v4713_v25  ;;  %v4811_v31 = vpack.c.bf16 %v619_v28, %v618_v27  ;;  %v1472_v27 = vld [vmem:[%s5862_s5 + $0x30] sm:$0xff]  ;;  %v1473_v28 = vld [vmem:[%s5862_s5 + $0x38] sm:$0xff] }
 0x1b0   :  { %3562 = vmatprep.subr.bf16.mxu1 %v4160_v19 }
 0x1b1   :  { %v332_v35 = vpop.permute.xlu1 %331  ;;  %3627 = vmatpush3.bf16.msra.mxu0 %v4498_v53 }
 0x1b2   :  { %337 = vst.msk [vmem:[#allocation2 + $0x8] sm:$0xff] %vm304_vm4, %v332_v35  ;;  %3628 = vmatprep.subr.bf16.mxu0 %v4160_v19  ;;  %v621_v35 = vld [vmem:[%s5860_s3 + $0x1f8] sm:$0xff] }
 0x1b3   :  { %3564 = vmatpush3.bf16.msra.mxu1 %v4726_v29  ;;  %v4821_v37 = vpack.c.bf16 %v621_v35, %v620_v34  ;;  %v1499_v34 = vld [vmem:[%s5862_s5 + $0xf8] sm:$0xff]  ;;  %v3851_v35 = vpack.c.bf16 %v1473_v28, %v1472_v27 }
 0x1b4   :  { %3589 = vmatprep.subr.bf16.mxu1 %v4160_v19 }
 0x1b5   :  { %v725_v43 = vld [vmem:[#allocation2 + $0x18] sm:$0x3f]  ;;  %3630 = vmatpush3.bf16.msra.mxu0 %v4519_v63 }
 0x1b6   :  { %3133 = vmatmul.mubr.f32.vlgmr.msra.gmra.mrb[2].mxu1 %v340_v39  ;;  %v4114_v44 = vpack.i.bf16 %v725_v43, %v724_v41  ;;  %3631 = vmatprep.subr.bf16.mxu0 %v4160_v19  ;;  %v999_v49 = vld [vmem:[#allocation2 + $0x18] sm:$0xfc]  ;;  %v623_v39 = vrot.slane %v605_v38, 2 }
 0x1b7   :  { %3591 = vmatpush3.bf16.msra.mxu1 %v4739_v36  ;;  %3202 = vmatprep.mubr.msk.f32.mxu1 %vm4163_vm1, %v4164_v33  ;;  %v1019_v1 = vrot.slane %v999_v49, 2 }
 0x1b8   :  { %4115 = vrot.lane.b32.xlu0 %v4114_v44, %s4162_s21  ;;  %3592 = vmatprep.subr.bf16.mxu1 %v4160_v19 }
 0x1b9   :  { %v707_v56 = vld [vmem:[#allocation2 + $0x8] sm:$0x3f]  ;;  %3633 = vmatpush3.bf16.msra.mxu0 %v4540_v9  ;;  %v4129_v10 = vpack.i.bf16 %v1019_v1, %v1018_v5  ;;  %v1469_v5 = vld [vmem:[%s5862_s5 + $0x18] sm:$0xff] }
 0x1ba   :  { %v900_v57 = vld [vmem:[#allocation2 + $0x8] sm:$0xfc]  ;;  %v4119_v60 = vpack.i.bf16 %v707_v56, %v706_v55  ;;  %3634 = vmatprep.subr.bf16.mxu0 %v4160_v19 }
 0x1bb   :  { %v920_v62 = vrot.slane %v900_v57, 2  ;;  %3594 = vmatpush3.bf16.msra.mxu1 %v4751_v46 }
 0x1bc   :  { %4120 = vrot.lane.b32.xlu1 %v4119_v60, %s4162_s21  ;;  %3595 = vmatprep.subr.bf16.mxu1 %v4160_v19 }
 0x1bd   :  { %v4124_v3 = vpack.i.bf16 %v920_v62, %v919_v61  ;;  %3636 = vmatpush3.bf16.msra.mxu0 %v4561_v21 }
 0x1be   :  { %3661 = vmatprep.subr.bf16.mxu0 %v4160_v19 }
 0x1bf   :  { %4125 = vrot.lane.b32.xlu0 %v4124_v3, %s4162_s21  ;;  %3597 = vmatpush3.bf16.msra.mxu1 %v4766_v2 }
 0x1c0   :  { %4130 = vrot.lane.b32.xlu1 %v4129_v10, %s4162_s21  ;;  %3598 = vmatprep.subr.bf16.mxu1 %v4160_v19 }
 0x1c3   :  { %3600 = vmatpush3.bf16.msra.mxu1 %v4780_v11 }
 0x1c4   :  { %3601 = vmatprep.subr.bf16.mxu1 %v4160_v19 }
 0x1c7   :  { %3603 = vmatpush3.bf16.msra.mxu1 %v4791_v16 }
 0x1c8   :  { %3604 = vmatprep.subr.bf16.mxu1 %v4160_v19 }
 0x1cb   :  { %3606 = vmatpush3.bf16.msra.mxu1 %v4801_v26 }
 0x1cc   :  { %3607 = vmatprep.subr.bf16.mxu1 %v4160_v19 }
 0x1cf   :  { %3609 = vmatpush3.bf16.msra.mxu1 %v4811_v31 }
 0x1d0   :  { %3610 = vmatprep.subr.bf16.mxu1 %v4160_v19 }
 0x1d3   :  { %3612 = vmatpush3.bf16.msra.mxu1 %v4821_v37 }
 0x1d4   :  { %3637 = vmatprep.subr.bf16.mxu1 %v4160_v19 }
 0x1d6   :  { %3203 = vmatmul.mubr.f32.vlgmr.msra.gmra.mrb[4].mxu1 %v623_v39  ;;  %v1474_v39 = vld [vmem:[%s5862_s5 + $0x40] sm:$0xff] }
 0x1d7   :  { %3639 = vmatpush3.bf16.msra.mxu1 %v4639_v47  ;;  %3272 = vmatprep.mubr.msk.f32.mxu1 %vm4163_vm1, %v4164_v33 }
 0x1d8   :  { %3640 = vmatprep.subr.bf16.mxu1 %v4160_v19 }
 0x1db   :  { %3642 = vmatpush3.bf16.msra.mxu1 %v4649_v58 }
 0x1dc   :  { %3643 = vmatprep.subr.bf16.mxu1 %v4160_v19 }
 0x1df   :  { %3645 = vmatpush3.bf16.msra.mxu1 %v4662_v0 }
 0x1e0   :  { %3646 = vmatprep.subr.bf16.mxu1 %v4160_v19 }
 0x1e3   :  { %3648 = vmatpush3.bf16.msra.mxu1 %v4673_v7 }
 0x1e4   :  { %3649 = vmatprep.subr.bf16.mxu1 %v4160_v19 }
 0x1e7   :  { %3651 = vmatpush3.bf16.msra.mxu1 %v4688_v12 }
 0x1e8   :  { %3652 = vmatprep.subr.bf16.mxu1 %v4160_v19 }
 0x1eb   :  { %3654 = vmatpush3.bf16.msra.mxu1 %v4701_v17 }
 0x1ec   :  { %3655 = vmatprep.subr.bf16.mxu1 %v4160_v19 }
 0x1ef   :  { %3657 = vmatpush3.bf16.msra.mxu1 %v4713_v25 }
 0x1f0   :  { %3658 = vmatprep.subr.bf16.mxu1 %v4160_v19 }
 0x1f3   :  { %3660 = vmatpush3.bf16.msra.mxu1 %v4726_v29 }
 0x1f4   :  { %3685 = vmatprep.subr.bf16.mxu1 %v4160_v19 }
 0x22a   :  { %v4116_v41 = vpop.permute.xlu0 %4115 }
 0x22b   :  { %v4118_v43 = vunpack.i.h.bf16 %v4116_v41  ;;  %v4117_v44 = vunpack.i.l.bf16 %v4116_v41  ;;  %v1475_v41 = vld [vmem:[%s5862_s5 + $0x48] sm:$0xff] }
 0x22d   :  { %v749_v24 = vsel %vm748_vm5, %v4117_v44, %v4118_v43  ;;  %v1500_v44 = vld [vmem:[%s5862_s5 + $0x100] sm:$0xff] }
 0x22e   :  { %v4121_v49 = vpop.permute.xlu1 %4120  ;;  %3238 = vmatmul.mubr.f32.vlgmr.msra.gmra.mrb[34].mxu0 %v749_v24  ;;  %v1501_v24 = vld [vmem:[%s5862_s5 + $0x108] sm:$0xff] }
 0x22f   :  { %v4123_v50 = vunpack.i.h.bf16 %v4121_v49  ;;  %v4122_v51 = vunpack.i.l.bf16 %v4121_v49  ;;  %3663 = vmatpush3.bf16.msra.mxu0 %v4470_v40  ;;  %3307 = vmatprep.mubr.msk.f32.mxu0 %vm4163_vm1, %v4164_v33  ;;  %v3854_v49 = vpack.c.bf16 %v1475_v41, %v1474_v39 }
 0x230   :  { %3664 = vmatprep.subr.bf16.mxu0 %v4160_v19 }
 0x231   :  { %v827_v52 = vsel %vm748_vm5, %v4122_v51, %v4123_v50  ;;  %v4126_v55 = vpop.permute.xlu0 %4125  ;;  %v3818_v51 = vpack.c.bf16 %v1501_v24, %v1500_v44 }
 0x232   :  { %3273 = vmatmul.mubr.f32.vlgmr.msra.gmra.mrb[6].mxu1 %v827_v52  ;;  %v4128_v56 = vunpack.i.h.bf16 %v4126_v55  ;;  %v4127_v57 = vunpack.i.l.bf16 %v4126_v55  ;;  %v4131_v60 = vpop.permute.xlu1 %4130  ;;  %v1476_v52 = vld [vmem:[%s5862_s5 + $0x50] sm:$0xff]  ;;  %v1477_v55 = vld [vmem:[%s5862_s5 + $0x58] sm:$0xff] }
 0x233   :  { %3666 = vmatpush3.bf16.msra.mxu0 %v4486_v48  ;;  %3687 = vmatpush3.bf16.msra.mxu1 %v4739_v36  ;;  %v4133_v61 = vunpack.i.h.bf16 %v4131_v60  ;;  %v4132_v62 = vunpack.i.l.bf16 %v4131_v60  ;;  %v1502_v60 = vld [vmem:[%s5862_s5 + $0x110] sm:$0xff] }
 0x234   :  { %3667 = vmatprep.subr.bf16.mxu0 %v4160_v19  ;;  %3688 = vmatprep.subr.bf16.mxu1 %v4160_v19  ;;  %v925_v1 = vsel %vm748_vm5, %v4127_v57, %v4128_v56 }
 0x235   :  { %3342 = vmatprep.mubr.msk.f32.mxu1 %vm4163_vm1, %v4164_v33  ;;  %v1024_v3 = vsel %vm748_vm5, %v4132_v62, %v4133_v61  ;;  %v1503_v61 = vld [vmem:[%s5862_s5 + $0x118] sm:$0xff]  ;;  %v3857_v62 = vpack.c.bf16 %v1477_v55, %v1476_v52 }
 0x237   :  { %3669 = vmatpush3.bf16.msra.mxu0 %v4511_v59  ;;  %3690 = vmatpush3.bf16.msra.mxu1 %v4751_v46 }
 0x238   :  { %3670 = vmatprep.subr.bf16.mxu0 %v4160_v19  ;;  %3691 = vmatprep.subr.bf16.mxu1 %v4160_v19 }
 0x23b   :  { %3672 = vmatpush3.bf16.msra.mxu0 %v4530_v4  ;;  %3693 = vmatpush3.bf16.msra.mxu1 %v4766_v2 }
 0x23c   :  { %3673 = vmatprep.subr.bf16.mxu0 %v4160_v19  ;;  %3694 = vmatprep.subr.bf16.mxu1 %v4160_v19 }
 0x23f   :  { %3675 = vmatpush3.bf16.msra.mxu0 %v4553_v15  ;;  %3696 = vmatpush3.bf16.msra.mxu1 %v4780_v11 }
 0x240   :  { %3676 = vmatprep.subr.bf16.mxu0 %v4160_v19  ;;  %3697 = vmatprep.subr.bf16.mxu1 %v4160_v19 }
 0x243   :  { %3678 = vmatpush3.bf16.msra.mxu0 %v4575_v30  ;;  %3699 = vmatpush3.bf16.msra.mxu1 %v4791_v16 }
 0x244   :  { %3679 = vmatprep.subr.bf16.mxu0 %v4160_v19  ;;  %3700 = vmatprep.subr.bf16.mxu1 %v4160_v19 }
 0x247   :  { %3681 = vmatpush3.bf16.msra.mxu0 %v4592_v42  ;;  %3702 = vmatpush3.bf16.msra.mxu1 %v4801_v26 }
 0x248   :  { %3682 = vmatprep.subr.bf16.mxu0 %v4160_v19  ;;  %3703 = vmatprep.subr.bf16.mxu1 %v4160_v19 }
 0x24b   :  { %3684 = vmatpush3.bf16.msra.mxu0 %v4606_v54  ;;  %3705 = vmatpush3.bf16.msra.mxu1 %v4811_v31 }
 0x24c   :  { %3706 = vmatprep.subr.bf16.mxu1 %v4160_v19  ;;  %3709 = vmatprep.subr.bf16.mxu0 %v4160_v19 }
 0x24e   :  { %3308 = vmatmul.mubr.f32.vlgmr.msra.gmra.mrb[36].mxu0 %v925_v1  ;;  %v3821_v1 = vpack.c.bf16 %v1503_v61, %v1502_v60 }
 0x24f   :  { %3708 = vmatpush3.bf16.msra.mxu1 %v4821_v37  ;;  %3711 = vmatpush3.bf16.msra.mxu0 %v4431_v20 }
 0x250   :  { %3712 = vmatprep.subr.bf16.mxu0 %v4160_v19  ;;  %3733 = vmatprep.subr.bf16.mxu1 %v4160_v19 }
 0x251   :  { %3377 = vmatprep.mubr.msk.f32.mxu0 %vm4163_vm1, %v4164_v33 }
 0x252   :  { %3343 = vmatmul.mubr.f32.vlgmr.msra.gmra.mrb[8].mxu1 %v1024_v3  ;;  %v1478_v3 = vld [vmem:[%s5862_s5 + $0x60] sm:$0xff] }
 0x253   :  { %3714 = vmatpush3.bf16.msra.mxu0 %v4438_v22  ;;  %3735 = vmatpush3.bf16.msra.mxu1 %v4639_v47 }
 0x254   :  { %3715 = vmatprep.subr.bf16.mxu0 %v4160_v19  ;;  %3736 = vmatprep.subr.bf16.mxu1 %v4160_v19 }
 0x255   :  { %3412 = vmatprep.mubr.msk.f32.mxu1 %vm4163_vm1, %v4164_v33 }
 0x257   :  { %3717 = vmatpush3.bf16.msra.mxu0 %v4455_v32  ;;  %3738 = vmatpush3.bf16.msra.mxu1 %v4649_v58  ;;  %v1122_v32 = vld [vmem:[#allocation2 + $0x18] sm:$0x3f] }
 0x258   :  { %3718 = vmatprep.subr.bf16.mxu0 %v4160_v19  ;;  %3739 = vmatprep.subr.bf16.mxu1 %v4160_v19 }
 0x25b   :  { %3720 = vmatpush3.bf16.msra.mxu0 %v4481_v45  ;;  %3741 = vmatpush3.bf16.msra.mxu1 %v4662_v0  ;;  %v1105_v45 = vld [vmem:[#allocation2 + $0x8] sm:$0x3f] }
 0x25c   :  { %3721 = vmatprep.subr.bf16.mxu0 %v4160_v19  ;;  %3742 = vmatprep.subr.bf16.mxu1 %v4160_v19 }
 0x25f   :  { %3723 = vmatpush3.bf16.msra.mxu0 %v4498_v53  ;;  %3744 = vmatpush3.bf16.msra.mxu1 %v4673_v7 }
 0x260   :  { %3724 = vmatprep.subr.bf16.mxu0 %v4160_v19  ;;  %3745 = vmatprep.subr.bf16.mxu1 %v4160_v19 }
 0x263   :  { %3726 = vmatpush3.bf16.msra.mxu0 %v4519_v63  ;;  %3747 = vmatpush3.bf16.msra.mxu1 %v4688_v12  ;;  %v1466_v12 = vld [vmem:[%s5862_s5] sm:$0xff] }
 0x264   :  { %3727 = vmatprep.subr.bf16.mxu0 %v4160_v19  ;;  %3748 = vmatprep.subr.bf16.mxu1 %v4160_v19 }
 0x267   :  { %3729 = vmatpush3.bf16.msra.mxu0 %v4540_v9  ;;  %3750 = vmatpush3.bf16.msra.mxu1 %v4701_v17  ;;  %v1467_v17 = vld [vmem:[%s5862_s5 + $0x8] sm:$0xff] }
 0x268   :  { %3730 = vmatprep.subr.bf16.mxu0 %v4160_v19  ;;  %3751 = vmatprep.subr.bf16.mxu1 %v4160_v19 }
 0x269   :  { %v440_v20 = vpop.f32.mrb[0].mxu1 }
 0x26a   :  { %v3099_v22 = vpop.f32.mrb[1].mxu1 }
 0x26b   :  { %3732 = vmatpush3.bf16.msra.mxu0 %v4561_v21  ;;  %3753 = vmatpush3.bf16.msra.mxu1 %v4713_v25  ;;  %v1370_v21 = vld [vmem:[#allocation2 + $0x18] sm:$0xfc]  ;;  %v3842_v25 = vpack.c.bf16 %v1467_v17, %v1466_v12  ;;  %v1504_v22 = vld [vmem:[%s5862_s5 + $0x120] sm:$0xff]  ;;  %v1510_v12 = vld [vmem:[%s5862_s5 + $0x150] sm:$0xff] }
 0x26c   :  { %3754 = vmatprep.subr.bf16.mxu1 %v4160_v19  ;;  %3757 = vmatprep.subr.bf16.mxu0 %v4160_v19  ;;  %v1511_v17 = vld [vmem:[%s5862_s5 + $0x158] sm:$0xff] }
 0x26e   :  { %3378 = vmatmul.mubr.f32.vlgmr.msra.gmra.mrb[38].mxu0 %v1122_v32  ;;  %v1505_v32 = vld [vmem:[%s5862_s5 + $0x128] sm:$0xff] }
 0x26f   :  { %3756 = vmatpush3.bf16.msra.mxu1 %v4726_v29  ;;  %3759 = vmatpush3.bf16.msra.mxu0 %v4470_v40  ;;  %v1492_v29 = vld [vmem:[%s5862_s5 + $0xc0] sm:$0xff] }
 0x270   :  { %3760 = vmatprep.subr.bf16.mxu0 %v4160_v19  ;;  %3781 = vmatprep.subr.bf16.mxu1 %v4160_v19 }
 0x271   :  { %3447 = vmatprep.mubr.msk.f32.mxu0 %vm4163_vm1, %v4164_v33 }
 0x272   :  { %3413 = vmatmul.mubr.f32.vlgmr.msra.gmra.mrb[10].mxu1 %v1105_v45 }
 0x273   :  { %3762 = vmatpush3.bf16.msra.mxu0 %v4486_v48  ;;  %3783 = vmatpush3.bf16.msra.mxu1 %v4739_v36  ;;  %v600_v53 = vpop.f32.mrb[32].mxu0  ;;  %v1279_v48 = vld [vmem:[#allocation2 + $0x8] sm:$0xfc] }
 0x274   :  { %v3169_v63 = vpop.f32.mrb[33].mxu0  ;;  %3763 = vmatprep.subr.bf16.mxu0 %v4160_v19  ;;  %3784 = vmatprep.subr.bf16.mxu1 %v4160_v19  ;;  %v1297_v9 = vrot.slane %v1279_v48, 2  ;;  %v1493_v36 = vld [vmem:[%s5862_s5 + $0xc8] sm:$0xff]  ;;  %v1506_v48 = vld [vmem:[%s5862_s5 + $0x130] sm:$0xff] }
 0x275   :  { %3482 = vmatprep.mubr.msk.f32.mxu1 %vm4163_vm1, %v4164_v33  ;;  %v1480_v63 = vld [vmem:[%s5862_s5 + $0x70] sm:$0xff] }
 0x277   :  { %3765 = vmatpush3.bf16.msra.mxu0 %v4511_v59  ;;  %3786 = vmatpush3.bf16.msra.mxu1 %v4751_v46  ;;  %v1468_v46 = vld [vmem:[%s5862_s5 + $0x10] sm:$0xff] }
 0x278   :  { %3766 = vmatprep.subr.bf16.mxu0 %v4160_v19  ;;  %3787 = vmatprep.subr.bf16.mxu1 %v4160_v19  ;;  %v3845_v10 = vpack.c.bf16 %v1469_v5, %v1468_v46  ;;  %v1487_v46 = vld [vmem:[%s5862_s5 + $0xa8] sm:$0xff]  ;;  %v1512_v5 = vld [vmem:[%s5862_s5 + $0x160] sm:$0xff] }
 0x27b   :  { %3768 = vmatpush3.bf16.msra.mxu0 %v4530_v4  ;;  %3789 = vmatpush3.bf16.msra.mxu1 %v4766_v2  ;;  %v3806_v2 = vpack.c.bf16 %v1493_v36, %v1492_v29  ;;  %v3833_v29 = vpack.c.bf16 %v1511_v17, %v1510_v12  ;;  %v1486_v36 = vld [vmem:[%s5862_s5 + $0xa0] sm:$0xff]  ;;  %v1679_v12 = vld [vmem:[%s5862_s5 + $0x1d8] sm:$0xff] }
 0x27c   :  { %3769 = vmatprep.subr.bf16.mxu0 %v4160_v19  ;;  %3790 = vmatprep.subr.bf16.mxu1 %v4160_v19 }
 0x27f   :  { %3771 = vmatpush3.bf16.msra.mxu0 %v4553_v15  ;;  %3792 = vmatpush3.bf16.msra.mxu1 %v4780_v11  ;;  %v3809_v11 = vpack.c.bf16 %v1495_v8, %v1494_v6  ;;  %v1513_v6 = vld [vmem:[%s5862_s5 + $0x168] sm:$0xff] }
 0x280   :  { %3772 = vmatprep.subr.bf16.mxu0 %v4160_v19  ;;  %3793 = vmatprep.subr.bf16.mxu1 %v4160_v19  ;;  %v3836_v8 = vpack.c.bf16 %v1513_v6, %v1512_v5  ;;  %v1684_v6 = vld [vmem:[%s5862_s5 + $0x200] sm:$0xff] }
 0x283   :  { %3774 = vmatpush3.bf16.msra.mxu0 %v4575_v30  ;;  %3795 = vmatpush3.bf16.msra.mxu1 %v4791_v16  ;;  %v1388_v30 = vrot.slane %v1370_v21, 2  ;;  %v1496_v16 = vld [vmem:[%s5862_s5 + $0xe0] sm:$0xff]  ;;  %v1483_v21 = vld [vmem:[%s5862_s5 + $0x88] sm:$0xff] }
 0x284   :  { %3775 = vmatprep.subr.bf16.mxu0 %v4160_v19  ;;  %3796 = vmatprep.subr.bf16.mxu1 %v4160_v19 }
 0x287   :  { %3777 = vmatpush3.bf16.msra.mxu0 %v4592_v42  ;;  %3798 = vmatpush3.bf16.msra.mxu1 %v4801_v26  ;;  %v4959_v42 = vld [vmem:[%s5861_s4] ss:$0 sm:$0xff]  ;;  %v3812_v26 = vpack.c.bf16 %v1497_v18, %v1496_v16  ;;  %v1515_v16 = vld [vmem:[%s5862_s5 + $0x178] sm:$0xff] }
 0x288   :  { %3778 = vmatprep.subr.bf16.mxu0 %v4160_v19  ;;  %3799 = vmatprep.subr.bf16.mxu1 %v4160_v19 }
 0x289   :  { %v510_v40 = vpop.f32.mrb[2].mxu1 }
 0x28a   :  { %v511_v59 = vadd.f32 %v510_v40, %v440_v20  ;;  %v3134_v4 = vpop.f32.mrb[3].mxu1  ;;  %v1479_v20 = vld [vmem:[%s5862_s5 + $0x68] sm:$0xff]  ;;  %v1481_v40 = vld [vmem:[%s5862_s5 + $0x78] sm:$0xff] }
 0x28b   :  { %3780 = vmatpush3.bf16.msra.mxu0 %v4606_v54  ;;  %3801 = vmatpush3.bf16.msra.mxu1 %v4811_v31  ;;  %v1498_v31 = vld [vmem:[%s5862_s5 + $0xf0] sm:$0xff]  ;;  %v3860_v45 = vpack.c.bf16 %v1479_v20, %v1478_v3  ;;  %v3863_v4 = vpack.c.bf16 %v1481_v40, %v1480_v63  ;;  %v1668_v3 = vld [vmem:[%s5862_s5 + $0x180] sm:$0xff]  ;;  %v1671_v40 = vld [vmem:[%s5862_s5 + $0x198] sm:$0xff] }
 0x28c   :  { %3802 = vmatprep.subr.bf16.mxu1 %v4160_v19  ;;  %v604_v15 = vadd.f32 %v600_v53, %v511_v59  ;;  %3805 = vmatprep.subr.bf16.mxu0 %v4160_v19  ;;  %v3815_v38 = vpack.c.bf16 %v1499_v34, %v1498_v31  ;;  %v3824_v53 = vpack.c.bf16 %v1505_v32, %v1504_v22  ;;  %v1507_v59 = vld [vmem:[%s5862_s5 + $0x138] sm:$0xff]  ;;  %v1670_v63 = vld [vmem:[%s5862_s5 + $0x190] sm:$0xff] }
 0x28e   :  { %3448 = vmatmul.mubr.f32.vlgmr.msra.gmra.mrb[40].mxu0 %v1297_v9  ;;  %v3827_v9 = vpack.c.bf16 %v1507_v59, %v1506_v48  ;;  %v3881_v59 = vpack.c.bf16 %v1671_v40, %v1670_v63  ;;  %v1811_v63 = vld [vmem:[%s5864_s7 + $0x100] sm:$0xff] }
 0x28f   :  { %3804 = vmatpush3.bf16.msra.mxu1 %v4821_v37  ;;  %3807 = vmatpush1.bf16.msra.mxu0 %v3806_v2  ;;  %v3872_v2 = vpack.c.bf16 %v1487_v46, %v1486_v36  ;;  %v1682_v46 = vld [vmem:[%s5862_s5 + $0x1f0] sm:$0xff]  ;;  %v1819_v40 = vld [vmem:[%s5864_s7 + $0x140] sm:$0xff] }
 0x290   :  { %3841 = vmatprep.subr.bf16.mxu1 %v4160_v19  ;;  %3808 = vmatprep.subr.bf16.mxu0 %v4160_v19 }
 0x292   :  { %3483 = vmatmul.mubr.f32.vlgmr.msra.gmra.mrb[12].mxu1 %v1388_v30  ;;  %v1508_v30 = vld [vmem:[%s5862_s5 + $0x140] sm:$0xff] }
 0x293   :  { %3843 = vmatpush1.bf16.msra.mxu1 %v3842_v25  ;;  %3810 = vmatpush1.bf16.msra.mxu0 %v3809_v11  ;;  %v1489_v11 = vld [vmem:[%s5862_s5 + $0xb8] sm:$0xff] }
 0x294   :  { %3844 = vmatprep.subr.bf16.mxu1 %v4160_v19  ;;  %3811 = vmatprep.subr.bf16.mxu0 %v4160_v19 }
 0x297   :  { %3846 = vmatpush1.bf16.msra.mxu1 %v3845_v10  ;;  %3813 = vmatpush1.bf16.msra.mxu0 %v3812_v26  ;;  %v1488_v10 = vld [vmem:[%s5862_s5 + $0xb0] sm:$0xff] }
 0x298   :  { %3847 = vmatprep.subr.bf16.mxu1 %v4160_v19  ;;  %3814 = vmatprep.subr.bf16.mxu0 %v4160_v19  ;;  %v3875_v14 = vpack.c.bf16 %v1489_v11, %v1488_v10  ;;  %v1686_v11 = vld [vmem:[%s5862_s5 + $0x210] sm:$0xff] }
 0x29b   :  { %3849 = vmatpush1.bf16.msra.mxu1 %v3848_v23  ;;  %3816 = vmatpush1.bf16.msra.mxu0 %v3815_v38  ;;  %v3839_v23 = vpack.c.bf16 %v1515_v16, %v1514_v13  ;;  %v1687_v13 = vld [vmem:[%s5862_s5 + $0x218] sm:$0xff]  ;;  %v1688_v16 = vld [vmem:[%s5862_s5 + $0x220] sm:$0xff] }
 0x29c   :  { %3850 = vmatprep.subr.bf16.mxu1 %v4160_v19  ;;  %3817 = vmatprep.subr.bf16.mxu0 %v4160_v19 }
 0x29f   :  { %3852 = vmatpush1.bf16.msra.mxu1 %v3851_v35  ;;  %3819 = vmatpush1.bf16.msra.mxu0 %v3818_v51 }
 0x2a0   :  { %3853 = vmatprep.subr.bf16.mxu1 %v4160_v19  ;;  %3820 = vmatprep.subr.bf16.mxu0 %v4160_v19 }
 0x2a3   :  { %3855 = vmatpush1.bf16.msra.mxu1 %v3854_v49  ;;  %3822 = vmatpush1.bf16.msra.mxu0 %v3821_v1 }
 0x2a4   :  { %3856 = vmatprep.subr.bf16.mxu1 %v4160_v19  ;;  %3823 = vmatprep.subr.bf16.mxu0 %v4160_v19 }
 0x2a7   :  { %3858 = vmatpush1.bf16.msra.mxu1 %v3857_v62  ;;  %3825 = vmatpush1.bf16.msra.mxu0 %v3824_v53 }
 0x2a8   :  { %3859 = vmatprep.subr.bf16.mxu1 %v4160_v19  ;;  %3826 = vmatprep.subr.bf16.mxu0 %v4160_v19 }
 0x2a9   :  { %v691_v54 = vpop.f32.mrb[4].mxu1 }
 0x2aa   :  { %v695_v47 = vadd.f32 %v691_v54, %v604_v15  ;;  %v3204_v58 = vpop.f32.mrb[5].mxu1  ;;  %v1482_v15 = vld [vmem:[%s5862_s5 + $0x80] sm:$0xff]  ;;  %v1509_v54 = vld [vmem:[%s5862_s5 + $0x148] sm:$0xff] }
 0x2ab   :  { %3861 = vmatpush1.bf16.msra.mxu1 %v3860_v45  ;;  %3828 = vmatpush1.bf16.msra.mxu0 %v3827_v9  ;;  %v3830_v58 = vpack.c.bf16 %v1509_v54, %v1508_v30  ;;  %v1673_v9 = vld [vmem:[%s5862_s5 + $0x1a8] sm:$0xff]  ;;  %v1675_v30 = vld [vmem:[%s5862_s5 + $0x1b8] sm:$0xff] }
 0x2ac   :  { %v702_v0 = vadd.f32 %v4959_v42, %v695_v47  ;;  %3862 = vmatprep.subr.bf16.mxu1 %v4160_v19  ;;  %v3866_v47 = vpack.c.bf16 %v1483_v21, %v1482_v15  ;;  %3829 = vmatprep.subr.bf16.mxu0 %v4160_v19  ;;  %v1674_v21 = vld [vmem:[%s5862_s5 + $0x1b0] sm:$0xff] }
 0x2ad   :  { %v3887_v54 = vpack.c.bf16 %v1675_v30, %v1674_v21  ;;  %v1825_v21 = vld [vmem:[%s5864_s7 + $0x170] sm:$0xff] }
 0x2ae   :  { %v703_v7 = vmax.f32 %v702_v0, 0.0  ;;  %v1484_v0 = vld [vmem:[%s5862_s5 + $0x90] sm:$0xff] }
 0x2af   :  { %3864 = vmatpush1.bf16.msra.mxu1 %v3863_v4  ;;  %3831 = vmatpush1.bf16.msra.mxu0 %v3830_v58  ;;  %v1672_v4 = vld [vmem:[%s5862_s5 + $0x1a0] sm:$0xff]  ;;  %v1677_v58 = vld [vmem:[%s5862_s5 + $0x1c8] sm:$0xff] }
 0x2b0   :  { %705 = vst.msk [vmem:[#allocation3] sm:$0x3f] %vm704_vm6, %v703_v7  ;;  %3865 = vmatprep.subr.bf16.mxu1 %v4160_v19  ;;  %v1485_v7 = vld [vmem:[%s5862_s5 + $0x98] sm:$0xff]  ;;  %3832 = vmatprep.subr.bf16.mxu0 %v4160_v19  ;;  %v3884_v15 = vpack.c.bf16 %v1673_v9, %v1672_v4  ;;  %v3923_v4 = vpack.c.bf16 %v1819_v40, %v1811_v63 }
 0x2b1   :  { %v3869_v25 = vpack.c.bf16 %v1485_v7, %v1484_v0  ;;  %v1678_v7 = vld [vmem:[%s5862_s5 + $0x1d0] sm:$0xff]  ;;  %v1838_v40 = vld [vmem:[%s5864_s7 + $0x1d8] sm:$0xff] }
 0x2b2   :  { %v3893_v17 = vpack.c.bf16 %v1679_v12, %v1678_v7  ;;  %v1835_v7 = vld [vmem:[%s5864_s7 + $0x1c0] sm:$0xff]  ;;  %v1834_v12 = vld [vmem:[%s5864_s7 + $0x1b8] sm:$0xff] }
 0x2b3   :  { %3867 = vmatpush1.bf16.msra.mxu1 %v3866_v47  ;;  %3834 = vmatpush1.bf16.msra.mxu0 %v3833_v29  ;;  %v1676_v47 = vld [vmem:[%s5862_s5 + $0x1c0] sm:$0xff]  ;;  %v1681_v29 = vld [vmem:[%s5862_s5 + $0x1e8] sm:$0xff] }
 0x2b4   :  { %3868 = vmatprep.subr.bf16.mxu1 %v4160_v19  ;;  %3835 = vmatprep.subr.bf16.mxu0 %v4160_v19  ;;  %v3890_v0 = vpack.c.bf16 %v1677_v58, %v1676_v47  ;;  %v1836_v47 = vld [vmem:[%s5864_s7 + $0x1c8] sm:$0xff] }
 0x2b7   :  { %3870 = vmatpush1.bf16.msra.mxu1 %v3869_v25  ;;  %3837 = vmatpush1.bf16.msra.mxu0 %v3836_v8  ;;  %v1680_v25 = vld [vmem:[%s5862_s5 + $0x1e0] sm:$0xff]  ;;  %v1685_v8 = vld [vmem:[%s5862_s5 + $0x208] sm:$0xff] }
 0x2b8   :  { %3871 = vmatprep.subr.bf16.mxu1 %v4160_v19  ;;  %3838 = vmatprep.subr.bf16.mxu0 %v4160_v19  ;;  %v3896_v36 = vpack.c.bf16 %v1681_v29, %v1680_v25  ;;  %v3902_v10 = vpack.c.bf16 %v1685_v8, %v1684_v6  ;;  %v1842_v25 = vld [vmem:[%s5864_s7 + $0x1f8] sm:$0xff]  ;;  %v1833_v29 = vld [vmem:[%s5864_s7 + $0x1b0] sm:$0xff] }
 0x2b9   :  { %v1790_v6 = vld [vmem:[%s5864_s7 + $0x58] sm:$0xff] }
 0x2bb   :  { %3873 = vmatpush1.bf16.msra.mxu1 %v3872_v2  ;;  %3840 = vmatpush1.bf16.msra.mxu0 %v3839_v23  ;;  %v1683_v2 = vld [vmem:[%s5862_s5 + $0x1f8] sm:$0xff] }
 0x2bc   :  { %3874 = vmatprep.subr.bf16.mxu1 %v4160_v19  ;;  %3877 = vmatprep.subr.bf16.mxu0 %v4160_v19  ;;  %v3899_v5 = vpack.c.bf16 %v1683_v2, %v1682_v46  ;;  %v1841_v46 = vld [vmem:[%s5864_s7 + $0x1f0] sm:$0xff] }
 0x2bd   :  { %v3975_v2 = vpack.c.bf16 %v1841_v46, %v1833_v29  ;;  %v1808_v29 = vld [vmem:[%s5864_s7 + $0xe8] sm:$0xff] }
 0x2bf   :  { %3876 = vmatpush1.bf16.msra.mxu1 %v3875_v14  ;;  %v3905_v14 = vpack.c.bf16 %v1687_v13, %v1686_v11  ;;  %v2229_v11 = vld [vmem:[%s5866_s9 + $0x188] sm:$0xff] }
 0x301   :  { %v817_v37 = vpop.f32.mrb[34].mxu0 }
 0x302   :  { %v3239_v43 = vpop.f32.mrb[35].mxu0 }
 0x305   :  { %v895_v50 = vpop.f32.mrb[6].mxu1 }
 0x306   :  { %v5036_v56 = vadd.f32 %v895_v50, %v817_v37  ;;  %v3274_v57 = vpop.f32.mrb[7].mxu1 }
 0x321   :  { %v993_v18 = vpop.f32.mrb[36].mxu0 }
 0x322   :  { %v997_v26 = vadd.f32 %v993_v18, %v5036_v56  ;;  %v3309_v27 = vpop.f32.mrb[37].mxu0  ;;  %v1689_v18 = vld [vmem:[%s5862_s5 + $0x228] sm:$0xff] }
 0x323   :  { %v3908_v23 = vpack.c.bf16 %v1689_v18, %v1688_v16  ;;  %v1691_v27 = vld [vmem:[%s5862_s5 + $0x238] sm:$0xff] }
 0x325   :  { %v1092_v28 = vpop.f32.mrb[8].mxu1 }
 0x326   :  { %v1096_v31 = vadd.f32 %v1092_v28, %v997_v26  ;;  %v3344_v34 = vpop.f32.mrb[9].mxu1  ;;  %v1690_v26 = vld [vmem:[%s5862_s5 + $0x230] sm:$0xff] }
 0x327   :  { %v3911_v28 = vpack.c.bf16 %v1691_v27, %v1690_v26 }
 0x328   :  { %v1097_v35 = vadd.f32 %v4959_v42, %v1096_v31 }
 0x32a   :  { %v1098_v37 = vmax.f32 %v1097_v35, 0.0  ;;  %v1780_v35 = vld [vmem:[%s5864_s7 + $0x8] sm:$0xff] }
 0x32c   :  { %1100 = vrot.lane.b32.xlu0 %v1098_v37, %s4162_s21  ;;  %v1788_v37 = vld [vmem:[%s5864_s7 + $0x48] sm:$0xff] }
 0x341   :  { %v1205_v38 = vpop.f32.mrb[38].mxu0 }
 0x342   :  { %v3379_v39 = vpop.f32.mrb[39].mxu0 }
 0x343   :  { %v3913_v39 = vpack.c.bf16 %v1788_v37, %v1780_v35  ;;  %v1781_v35 = vld [vmem:[%s5864_s7 + $0x10] sm:$0xff] }
 0x344   :  { %v1789_v37 = vld [vmem:[%s5864_s7 + $0x50] sm:$0xff] }
 0x345   :  { %v1275_v41 = vpop.f32.mrb[10].mxu1  ;;  %3914 = vmatprep.subr.bf16.mxu1 %v3913_v39  ;;  %v1806_v39 = vld [vmem:[%s5864_s7 + $0xd8] sm:$0xff] }
 0x346   :  { %v1276_v43 = vadd.f32 %v1275_v41, %v1205_v38  ;;  %v3414_v44 = vpop.f32.mrb[11].mxu1  ;;  %v1779_v38 = vld [vmem:[%s5864_s7] sm:$0xff]  ;;  %v1786_v41 = vld [vmem:[%s5864_s7 + $0x38] sm:$0xff] }
 0x361   :  { %v1365_v24 = vpop.f32.mrb[40].mxu0 }
 0x362   :  { %v1369_v49 = vadd.f32 %v1365_v24, %v1276_v43  ;;  %v3449_v50 = vpop.f32.mrb[41].mxu0  ;;  %v1794_v43 = vld [vmem:[%s5864_s7 + $0x78] sm:$0xff] }
 0x363   :  { %v3961_v24 = vpack.c.bf16 %v1794_v43, %v1786_v41  ;;  %v1793_v50 = vld [vmem:[%s5864_s7 + $0x70] sm:$0xff]  ;;  %v2213_v41 = vld [vmem:[%s5866_s9 + $0x108] sm:$0xff] }
 0x365   :  { %v1456_v51 = vpop.f32.mrb[12].mxu1 }
 0x366   :  { %v1460_v52 = vadd.f32 %v1456_v51, %v1369_v49  ;;  %v3484_v55 = vpop.f32.mrb[13].mxu1  ;;  %v1785_v49 = vld [vmem:[%s5864_s7 + $0x30] sm:$0xff]  ;;  %v1796_v51 = vld [vmem:[%s5864_s7 + $0x88] sm:$0xff] }
 0x367   :  { %v1804_v55 = vld [vmem:[%s5864_s7 + $0xc8] sm:$0xff] }
 0x368   :  { %v1461_v56 = vadd.f32 %v4959_v42, %v1460_v52  ;;  %v1669_v42 = vld [vmem:[%s5862_s5 + $0x188] sm:$0xff]  ;;  %v3963_v52 = vpack.c.bf16 %v1793_v50, %v1785_v49  ;;  %v3931_v49 = vpack.c.bf16 %v1789_v37, %v1781_v35  ;;  %v2180_v37 = vld [vmem:[%s5866_s9] sm:$0xff] }
 0x369   :  { %v3878_v45 = vpack.c.bf16 %v1669_v42, %v1668_v3  ;;  %v1801_v3 = vld [vmem:[%s5864_s7 + $0xb0] sm:$0xff] }
 0x36a   :  { %v1462_v57 = vmax.f32 %v1461_v56, 0.0  ;;  %v1795_v56 = vld [vmem:[%s5864_s7 + $0x80] sm:$0xff] }
 0x36c   :  { %1463 = vst.msk [vmem:[#allocation3 + $0x8] sm:$0x3f] %vm704_vm6, %v1462_v57  ;;  %v1803_v57 = vld [vmem:[%s5864_s7 + $0xc0] sm:$0xff] }
 0x373   :  { %v1465_v60 = vld [vmem:[#allocation3 + $0x8] sm:$0x3]  ;;  %v1491_v61 = vld [vmem:[#allocation3 + $0x8] sm:$0xc]  ;;  %v1667_v20 = vld [vmem:[#allocation3 + $0x8] sm:$0x30] }
 0x374   :  { %2633 = vmatprep.mubr.msk.f32.mxu1 %vm748_vm5, %v1465_v60  ;;  %v1519_v62 = vrot.slane %v1491_v61, 2  ;;  %v1695_v48 = vrot.slane %v1667_v20, 4  ;;  %v3917_v60 = vpack.c.bf16 %v1804_v55, %v1796_v51  ;;  %v3919_v61 = vpack.c.bf16 %v1803_v57, %v1795_v56  ;;  %v1809_v20 = vld [vmem:[%s5864_s7 + $0xf0] sm:$0xff]  ;;  %v1814_v56 = vld [vmem:[%s5864_s7 + $0x118] sm:$0xff] }
 0x375   :  { %v1805_v55 = vld [vmem:[%s5864_s7 + $0xd0] sm:$0xff] }
 0x376   :  { %2632 = vmatprep.mubr.msk.f32.mxu0 %vm748_vm5, %v1519_v62  ;;  %v1802_v62 = vld [vmem:[%s5864_s7 + $0xb8] sm:$0xff] }
 0x39e   :  { %v1101_v1 = vpop.permute.xlu0 %1100 }
 0x39f   :  { %1104 = vst.msk [vmem:[#allocation3] sm:$0x3f] %vm1103_vm7, %v1101_v1  ;;  %v1810_v1 = vld [vmem:[%s5864_s7 + $0xf8] sm:$0xff] }
 0x3a0   :  { %v3965_v42 = vpack.c.bf16 %v1810_v1, %v1802_v62  ;;  %v2214_v62 = vld [vmem:[%s5866_s9 + $0x110] sm:$0xff]  ;;  %v2215_v1 = vld [vmem:[%s5866_s9 + $0x118] sm:$0xff] }
 0x3a1   :  { %v4015_v63 = vpack.c.bf16 %v2215_v1, %v2214_v62  ;;  %v2186_v1 = vld [vmem:[%s5866_s9 + $0x30] sm:$0xff] }
 0x3a6   :  { %v1464_v22 = vld [vmem:[#allocation3] sm:$0x3]  ;;  %v1490_v32 = vld [vmem:[#allocation3] sm:$0xc]  ;;  %v1666_v31 = vld [vmem:[#allocation3] sm:$0x30] }
 0x3a7   :  { %1661 = vmatmul.mubr.f32.vlgmr.msra.gmra.mrb[14].mxu1 %v1464_v22  ;;  %v1518_v53 = vrot.slane %v1490_v32, 2  ;;  %v1694_v34 = vrot.slane %v1666_v31, 4  ;;  %v1812_v22 = vld [vmem:[%s5864_s7 + $0x108] sm:$0xff] }
 0x3a8   :  { %1952 = vmatprep.mubr.f32.mxu1 %v4164_v33  ;;  %v1820_v32 = vld [vmem:[%s5864_s7 + $0x148] sm:$0xff] }
 0x3a9   :  { %1588 = vmatmul.mubr.f32.vlgmr.msra.gmra.mrb[42].mxu0 %v1518_v53  ;;  %v3921_v53 = vpack.c.bf16 %v1820_v32, %v1812_v22  ;;  %v1813_v32 = vld [vmem:[%s5864_s7 + $0x110] sm:$0xff] }
 0x3aa   :  { %3879 = vmatpush1.bf16.msra.mxu0 %v3878_v45  ;;  %2634 = vmatprep.mubr.msk.f32.mxu0 %vm748_vm5, %v1695_v48  ;;  %v3967_v45 = vpack.c.bf16 %v1809_v20, %v1801_v3  ;;  %v1818_v48 = vld [vmem:[%s5864_s7 + $0x138] sm:$0xff]  ;;  %v2232_v3 = vld [vmem:[%s5866_s9 + $0x1a0] sm:$0xff] }
 0x3ab   :  { %3880 = vmatprep.subr.bf16.mxu0 %v4160_v19 }
 0x3ae   :  { %3882 = vmatpush1.bf16.msra.mxu0 %v3881_v59  ;;  %v1826_v59 = vld [vmem:[%s5864_s7 + $0x178] sm:$0xff] }
 0x3af   :  { %3883 = vmatprep.subr.bf16.mxu0 %v4160_v19  ;;  %v3969_v9 = vpack.c.bf16 %v1826_v59, %v1818_v48  ;;  %v2216_v59 = vld [vmem:[%s5866_s9 + $0x120] sm:$0xff] }
 0x3b2   :  { %3885 = vmatpush1.bf16.msra.mxu0 %v3884_v15  ;;  %v1817_v15 = vld [vmem:[%s5864_s7 + $0x130] sm:$0xff] }
 0x3b3   :  { %3886 = vmatprep.subr.bf16.mxu0 %v4160_v19  ;;  %v3971_v30 = vpack.c.bf16 %v1825_v21, %v1817_v15  ;;  %v1829_v21 = vld [vmem:[%s5864_s7 + $0x190] sm:$0xff] }
 0x3b6   :  { %3888 = vmatpush1.bf16.msra.mxu0 %v3887_v54  ;;  %v1828_v54 = vld [vmem:[%s5864_s7 + $0x188] sm:$0xff] }
 0x3b7   :  { %3889 = vmatprep.subr.bf16.mxu0 %v4160_v19  ;;  %v3925_v58 = vpack.c.bf16 %v1836_v47, %v1828_v54  ;;  %v1784_v47 = vld [vmem:[%s5864_s7 + $0x28] sm:$0xff] }
 0x3ba   :  { %3891 = vmatpush1.bf16.msra.mxu0 %v3890_v0  ;;  %v1827_v0 = vld [vmem:[%s5864_s7 + $0x180] sm:$0xff] }
 0x3bb   :  { %3892 = vmatprep.subr.bf16.mxu0 %v4160_v19 }
 0x3be   :  { %3894 = vmatpush1.bf16.msra.mxu0 %v3893_v17  ;;  %v3927_v17 = vpack.c.bf16 %v1835_v7, %v1827_v0 }
 0x3bf   :  { %3895 = vmatprep.subr.bf16.mxu0 %v4160_v19 }
 0x3c2   :  { %3897 = vmatpush1.bf16.msra.mxu0 %v3896_v36  ;;  %v3973_v36 = vpack.c.bf16 %v1842_v25, %v1834_v12  ;;  %v1783_v12 = vld [vmem:[%s5864_s7 + $0x20] sm:$0xff]  ;;  %v1800_v25 = vld [vmem:[%s5864_s7 + $0xa8] sm:$0xff] }
 0x3c3   :  { %3898 = vmatprep.subr.bf16.mxu0 %v4160_v19  ;;  %v3949_v46 = vpack.c.bf16 %v1808_v29, %v1800_v25  ;;  %v2210_v25 = vld [vmem:[%s5866_s9 + $0xf0] sm:$0xff]  ;;  %v2211_v29 = vld [vmem:[%s5866_s9 + $0xf8] sm:$0xff] }
 0x3c6   :  { %3900 = vmatpush1.bf16.msra.mxu0 %v3899_v5  ;;  %v1782_v5 = vld [vmem:[%s5864_s7 + $0x18] sm:$0xff] }
 0x3c7   :  { %3901 = vmatprep.subr.bf16.mxu0 %v4160_v19  ;;  %v3929_v8 = vpack.c.bf16 %v1790_v6, %v1782_v5  ;;  %v1807_v5 = vld [vmem:[%s5864_s7 + $0xe0] sm:$0xff]  ;;  %v1816_v6 = vld [vmem:[%s5864_s7 + $0x128] sm:$0xff] }
 0x3ca   :  { %3903 = vmatpush1.bf16.msra.mxu0 %v3902_v10  ;;  %v2228_v10 = vld [vmem:[%s5866_s9 + $0x180] sm:$0xff] }
 0x3cb   :  { %3904 = vmatprep.subr.bf16.mxu0 %v4160_v19  ;;  %v4009_v13 = vpack.c.bf16 %v2229_v11, %v2228_v10 }
 0x3ce   :  { %3906 = vmatpush1.bf16.msra.mxu0 %v3905_v14 }
 0x3cf   :  { %3907 = vmatprep.subr.bf16.mxu0 %v4160_v19 }
 0x3d2   :  { %3909 = vmatpush1.bf16.msra.mxu0 %v3908_v23 }
 0x3d3   :  { %3910 = vmatprep.subr.bf16.mxu0 %v4160_v19  ;;  %v1787_v19 = vld [vmem:[%s5864_s7 + $0x40] sm:$0xff] }
 0x3d4   :  { %v3915_v44 = vpack.c.bf16 %v1787_v19, %v1779_v38  ;;  %v1798_v38 = vld [vmem:[%s5864_s7 + $0x98] sm:$0xff]  ;;  %v2212_v19 = vld [vmem:[%s5866_s9 + $0x100] sm:$0xff] }
 0x3d5   :  { %v3933_v51 = vpack.c.bf16 %v1806_v39, %v1798_v38  ;;  %v4011_v57 = vpack.c.bf16 %v2213_v41, %v2212_v19  ;;  %v2181_v38 = vld [vmem:[%s5866_s9 + $0x8] sm:$0xff]  ;;  %v2198_v39 = vld [vmem:[%s5866_s9 + $0x90] sm:$0xff]  ;;  %v2199_v19 = vld [vmem:[%s5866_s9 + $0x98] sm:$0xff] }
 0x3d6   :  { %3912 = vmatpush1.bf16.msra.mxu0 %v3911_v28  ;;  %3916 = vmatpush1.bf16.msra.mxu1 %v3915_v44  ;;  %v2635_v28 = vld [vmem:[%s5863_s6] ss:$0 sm:$0xff]  ;;  %v2230_v44 = vld [vmem:[%s5866_s9 + $0x190] sm:$0xff]  ;;  %v3979_v41 = vpack.c.bf16 %v2181_v38, %v2180_v37  ;;  %v2223_v37 = vld [vmem:[%s5866_s9 + $0x158] sm:$0xff] }
 0x3d7   :  { %3962 = vmatprep.subr.bf16.mxu0 %v3961_v24  ;;  %3918 = vmatprep.subr.bf16.mxu1 %v3917_v60  ;;  %v2231_v24 = vld [vmem:[%s5866_s9 + $0x198] sm:$0xff] }
 0x3d8   :  { %v1822_v60 = vld [vmem:[%s5864_s7 + $0x158] sm:$0xff] }
 0x3d9   :  { %1764 = vmatmul.mubr.f32.vlgmr.msra.gmra.mrb[44].mxu0 %v1694_v34  ;;  %v3937_v22 = vpack.c.bf16 %v1822_v60, %v1814_v56  ;;  %v2184_v56 = vld [vmem:[%s5866_s9 + $0x20] sm:$0xff]  ;;  %v2202_v60 = vld [vmem:[%s5866_s9 + $0xb0] sm:$0xff] }
 0x3da   :  { %2165 = vmatprep.mubr.f32.mxu0 %v4164_v33  ;;  %3964 = vmatpush1.bf16.msra.mxu0 %v3963_v52  ;;  %v1797_v52 = vld [vmem:[%s5864_s7 + $0x90] sm:$0xff] }
 0x3db   :  { %3966 = vmatprep.subr.bf16.mxu0 %v3965_v42  ;;  %3920 = vmatpush1.bf16.msra.mxu1 %v3919_v61  ;;  %v4013_v61 = vpack.c.bf16 %v2231_v24, %v2230_v44  ;;  %v2233_v42 = vld [vmem:[%s5866_s9 + $0x1a8] sm:$0xff]  ;;  %v3935_v20 = vpack.c.bf16 %v1805_v55, %v1797_v52  ;;  %v2182_v44 = vld [vmem:[%s5866_s9 + $0x10] sm:$0xff]  ;;  %v2183_v24 = vld [vmem:[%s5866_s9 + $0x18] sm:$0xff] }
 0x3dc   :  { %3922 = vmatprep.subr.bf16.mxu1 %v3921_v53  ;;  %v1830_v53 = vld [vmem:[%s5864_s7 + $0x198] sm:$0xff]  ;;  %v4017_v48 = vpack.c.bf16 %v2233_v42, %v2232_v3  ;;  %v3983_v52 = vpack.c.bf16 %v2183_v24, %v2182_v44  ;;  %v2204_v42 = vld [vmem:[%s5866_s9 + $0xc0] sm:$0xff]  ;;  %v2225_v44 = vld [vmem:[%s5866_s9 + $0x168] sm:$0xff] }
 0x3dd   :  { %v3941_v15 = vpack.c.bf16 %v1838_v40, %v1830_v53  ;;  %v2187_v3 = vld [vmem:[%s5866_s9 + $0x38] sm:$0xff]  ;;  %v2189_v53 = vld [vmem:[%s5866_s9 + $0x48] sm:$0xff] }
 0x3de   :  { %3968 = vmatpush1.bf16.msra.mxu0 %v3967_v45  ;;  %v1821_v45 = vld [vmem:[%s5864_s7 + $0x150] sm:$0xff]  ;;  %v2207_v40 = vld [vmem:[%s5866_s9 + $0xd8] sm:$0xff] }
 0x3df   :  { %3970 = vmatprep.subr.bf16.mxu0 %v3969_v9  ;;  %3924 = vmatpush1.bf16.msra.mxu1 %v3923_v4  ;;  %v2217_v4 = vld [vmem:[%s5866_s9 + $0x128] sm:$0xff]  ;;  %v3939_v9 = vpack.c.bf16 %v1821_v45, %v1813_v32  ;;  %v2188_v45 = vld [vmem:[%s5866_s9 + $0x40] sm:$0xff] }
 0x3e0   :  { %3926 = vmatprep.subr.bf16.mxu1 %v3925_v58  ;;  %v4019_v54 = vpack.c.bf16 %v2217_v4, %v2216_v59  ;;  %v1792_v58 = vld [vmem:[%s5864_s7 + $0x68] sm:$0xff]  ;;  %v2190_v4 = vld [vmem:[%s5866_s9 + $0x50] sm:$0xff] }
 0x3e1   :  { %v3945_v7 = vpack.c.bf16 %v1792_v58, %v1784_v47  ;;  %v2192_v47 = vld [vmem:[%s5866_s9 + $0x60] sm:$0xff]  ;;  %v2193_v58 = vld [vmem:[%s5866_s9 + $0x68] sm:$0xff] }
 0x3e2   :  { %3972 = vmatpush1.bf16.msra.mxu0 %v3971_v30  ;;  %v1837_v30 = vld [vmem:[%s5864_s7 + $0x1d0] sm:$0xff] }
 0x3e3   :  { %3928 = vmatpush1.bf16.msra.mxu1 %v3927_v17  ;;  %3974 = vmatprep.subr.bf16.mxu0 %v3973_v36  ;;  %v3943_v0 = vpack.c.bf16 %v1837_v30, %v1829_v21  ;;  %v1791_v17 = vld [vmem:[%s5864_s7 + $0x60] sm:$0xff]  ;;  %v2209_v21 = vld [vmem:[%s5866_s9 + $0xe8] sm:$0xff] }
 0x3e4   :  { %3930 = vmatprep.subr.bf16.mxu1 %v3929_v8  ;;  %v3947_v36 = vpack.c.bf16 %v1791_v17, %v1783_v12  ;;  %v1824_v8 = vld [vmem:[%s5864_s7 + $0x168] sm:$0xff]  ;;  %v2235_v12 = vld [vmem:[%s5866_s9 + $0x1b8] sm:$0xff] }
 0x3e5   :  { %v3953_v11 = vpack.c.bf16 %v1824_v8, %v1816_v6  ;;  %v2195_v6 = vld [vmem:[%s5866_s9 + $0x78] sm:$0xff] }
 0x3e6   :  { %3976 = vmatpush1.bf16.msra.mxu0 %v3975_v2  ;;  %v1799_v2 = vld [vmem:[%s5864_s7 + $0xa0] sm:$0xff] }
 0x3e7   :  { %4010 = vmatprep.subr.bf16.mxu0 %v4009_v13  ;;  %v3951_v10 = vpack.c.bf16 %v1807_v5, %v1799_v2  ;;  %v1815_v13 = vld [vmem:[%s5864_s7 + $0x120] sm:$0xff]  ;;  %v2219_v2 = vld [vmem:[%s5866_s9 + $0x138] sm:$0xff]  ;;  %v2194_v5 = vld [vmem:[%s5866_s9 + $0x70] sm:$0xff] }
 0x47a   :  { %v1662_v14 = vpop.f32.mrb[14].mxu1 }
 0x47b   :  { %v1664_v16 = vpop.f32.mrb[15].mxu1 }
 0x47c   :  { %v1589_v18 = vpop.f32.mrb[42].mxu0  ;;  %v1832_v16 = vld [vmem:[%s5864_s7 + $0x1a8] sm:$0xff] }
 0x47d   :  { %v1663_v23 = vadd.f32 %v1662_v14, %v1589_v18  ;;  %v1591_v26 = vpop.f32.mrb[43].mxu0  ;;  %v1823_v14 = vld [vmem:[%s5864_s7 + $0x160] sm:$0xff]  ;;  %v1840_v18 = vld [vmem:[%s5864_s7 + $0x1e8] sm:$0xff] }
 0x47e   :  { %v1831_v26 = vld [vmem:[%s5864_s7 + $0x1a0] sm:$0xff] }
 0x4ac   :  { %v1765_v27 = vpop.f32.mrb[44].mxu0 }
 0x4ad   :  { %v1769_v31 = vadd.f32 %v1765_v27, %v1663_v23  ;;  %v1767_v34 = vpop.f32.mrb[45].mxu0  ;;  %v3957_v23 = vpack.c.bf16 %v1840_v18, %v1832_v16  ;;  %v1839_v27 = vld [vmem:[%s5864_s7 + $0x1e0] sm:$0xff]  ;;  %v2221_v18 = vld [vmem:[%s5866_s9 + $0x148] sm:$0xff] }
 0x4ae   :  { %v3959_v34 = vpack.c.bf16 %v1839_v27, %v1831_v26  ;;  %v2220_v16 = vld [vmem:[%s5866_s9 + $0x140] sm:$0xff]  ;;  %v2261_v26 = vld [vmem:[%s5866_s9 + $0x288] sm:$0xff] }
 0x4af   :  { %v1777_v43 = vadd.f32 %v2635_v28, %v1769_v31  ;;  %v2196_v28 = vld [vmem:[%s5866_s9 + $0x80] sm:$0xff]  ;;  %v2197_v31 = vld [vmem:[%s5866_s9 + $0x88] sm:$0xff] }
 0x4b0   :  { %v3977_v35 = vpack.c.bf16 %v2197_v31, %v2196_v28  ;;  %v2238_v28 = vld [vmem:[%s5866_s9 + $0x1d0] sm:$0xff]  ;;  %v2239_v31 = vld [vmem:[%s5866_s9 + $0x1d8] sm:$0xff] }
 0x4b1   :  { %v5360_v50 = vmax.f32 %v1777_v43, 0.0  ;;  %v3981_v43 = vpack.c.bf16 %v2199_v19, %v2198_v39  ;;  %v2240_v39 = vld [vmem:[%s5866_s9 + $0x1e0] sm:$0xff]  ;;  %v2241_v19 = vld [vmem:[%s5866_s9 + $0x1e8] sm:$0xff] }
 0x4b3   :  { %2636 = vmatmul.mubr.msk.f32.vlgmr.msra.gmra.mrb[16].mxu1 %vm748_vm5, %v5360_v50  ;;  %2639 = vmatmul.mubr.msk.f32.vlgmr.msra.gmra.mrb[46].mxu0 %vm748_vm5, %v5360_v50 }
 0x4b4   :  { %3932 = vmatpush1.bf16.msra.mxu1 %v3931_v49  ;;  %2023 = vmatprep.mubr.f32.mxu1 %v4164_v33  ;;  %v2200_v49 = vld [vmem:[%s5866_s9 + $0xa0] sm:$0xff] }
 0x4b5   :  { %3934 = vmatprep.subr.bf16.mxu1 %v3933_v51  ;;  %4012 = vmatpush3.bf16.msra.mxu0 %v4011_v57  ;;  %v2201_v51 = vld [vmem:[%s5866_s9 + $0xa8] sm:$0xff] }
 0x4b6   :  { %4014 = vmatprep.subr.bf16.mxu0 %v4013_v61  ;;  %v3985_v55 = vpack.c.bf16 %v2201_v51, %v2200_v49  ;;  %v2185_v57 = vld [vmem:[%s5866_s9 + $0x28] sm:$0xff]  ;;  %v2242_v49 = vld [vmem:[%s5866_s9 + $0x1f0] sm:$0xff]  ;;  %v2243_v51 = vld [vmem:[%s5866_s9 + $0x1f8] sm:$0xff] }
 0x4b7   :  { %v3987_v61 = vpack.c.bf16 %v2185_v57, %v2184_v56  ;;  %v2227_v56 = vld [vmem:[%s5866_s9 + $0x178] sm:$0xff] }
 0x4b8   :  { %3936 = vmatpush1.bf16.msra.mxu1 %v3935_v20  ;;  %v2205_v20 = vld [vmem:[%s5866_s9 + $0xc8] sm:$0xff] }
 0x4b9   :  { %3938 = vmatprep.subr.bf16.mxu1 %v3937_v22  ;;  %4016 = vmatpush3.bf16.msra.mxu0 %v4015_v63  ;;  %v3991_v22 = vpack.c.bf16 %v2187_v3, %v2186_v1  ;;  %v3993_v32 = vpack.c.bf16 %v2205_v20, %v2204_v42  ;;  %v2206_v63 = vld [vmem:[%s5866_s9 + $0xd0] sm:$0xff]  ;;  %v5642_v42 = vld [vmem:[%s5865_s8] sm:$0xff] }
 0x4ba   :  { %4018 = vmatprep.subr.bf16.mxu0 %v4017_v48  ;;  %v3995_v48 = vpack.c.bf16 %v2189_v53, %v2188_v45  ;;  %v3997_v59 = vpack.c.bf16 %v2207_v40, %v2206_v63 }
 0x4bc   :  { %3940 = vmatpush1.bf16.msra.mxu1 %v3939_v9  ;;  %v2191_v9 = vld [vmem:[%s5866_s9 + $0x58] sm:$0xff] }
 0x4bd   :  { %3942 = vmatprep.subr.bf16.mxu1 %v3941_v15  ;;  %4020 = vmatpush3.bf16.msra.mxu0 %v4019_v54  ;;  %v2208_v15 = vld [vmem:[%s5866_s9 + $0xe0] sm:$0xff]  ;;  %v3999_v30 = vpack.c.bf16 %v2191_v9, %v2190_v4  ;;  %v2245_v4 = vld [vmem:[%s5866_s9 + $0x208] sm:$0xff] }
 0x4be   :  { %v4001_v54 = vpack.c.bf16 %v2209_v21, %v2208_v15  ;;  %v2262_v15 = vld [vmem:[%s5866_s9 + $0x290] sm:$0xff]  ;;  %v2263_v21 = vld [vmem:[%s5866_s9 + $0x298] sm:$0xff] }
 0x4c0   :  { %3944 = vmatpush1.bf16.msra.mxu1 %v3943_v0  ;;  %v4003_v0 = vpack.c.bf16 %v2193_v58, %v2192_v47  ;;  %v4045_v58 = vpack.c.bf16 %v2263_v21, %v2262_v15  ;;  %v2281_v15 = vld [vmem:[%s5866_s9 + $0x328] sm:$0xff] }
 0x4c1   :  { %3946 = vmatprep.subr.bf16.mxu1 %v3945_v7  ;;  %v2234_v7 = vld [vmem:[%s5866_s9 + $0x1b0] sm:$0xff] }
 0x4c2   :  { %v4021_v17 = vpack.c.bf16 %v2235_v12, %v2234_v7  ;;  %v2247_v7 = vld [vmem:[%s5866_s9 + $0x218] sm:$0xff]  ;;  %v2264_v12 = vld [vmem:[%s5866_s9 + $0x2a0] sm:$0xff] }
 0x4c3   :  { %2637 = vmatmul.mubr.msk.f32.vlgmr.msra.gmra.mrb[18].mxu1 %vm748_vm5, %v5360_v50 }
 0x4c4   :  { %3948 = vmatpush1.bf16.msra.mxu1 %v3947_v36  ;;  %2094 = vmatprep.mubr.f32.mxu1 %v4164_v33  ;;  %v3955_v33 = vpack.c.bf16 %v1823_v14, %v1815_v13  ;;  %v2218_v36 = vld [vmem:[%s5866_s9 + $0x130] sm:$0xff]  ;;  %v2237_v13 = vld [vmem:[%s5866_s9 + $0x1c8] sm:$0xff] }
 0x4c5   :  { %3950 = vmatprep.subr.bf16.mxu1 %v3949_v46  ;;  %v4005_v46 = vpack.c.bf16 %v2211_v29, %v2210_v25  ;;  %4022 = vmatprep.subr.bf16.mxu0 %v4021_v17  ;;  %v4023_v8 = vpack.c.bf16 %v2219_v2, %v2218_v36  ;;  %v2265_v17 = vld [vmem:[%s5866_s9 + $0x2a8] sm:$0xff] }
 0x4c6   :  { %v4049_v29 = vpack.c.bf16 %v2265_v17, %v2264_v12  ;;  %v2249_v2 = vld [vmem:[%s5866_s9 + $0x228] sm:$0xff]  ;;  %v2299_v12 = vld [vmem:[%s5866_s9 + $0x3b8] sm:$0xff]  ;;  %v2274_v17 = vld [vmem:[%s5866_s9 + $0x2f0] sm:$0xff] }
 0x4c7   :  { %4024 = vmatpush3.bf16.msra.mxu0 %v4023_v8  ;;  %v2267_v8 = vld [vmem:[%s5866_s9 + $0x2b8] sm:$0xff] }
 0x4c8   :  { %3952 = vmatpush1.bf16.msra.mxu1 %v3951_v10  ;;  %v4007_v10 = vpack.c.bf16 %v2195_v6, %v2194_v5  ;;  %v2266_v6 = vld [vmem:[%s5866_s9 + $0x2b0] sm:$0xff] }
 0x4c9   :  { %3954 = vmatprep.subr.bf16.mxu1 %v3953_v11  ;;  %v2236_v11 = vld [vmem:[%s5866_s9 + $0x1c0] sm:$0xff] }
 0x4ca   :  { %v4025_v14 = vpack.c.bf16 %v2237_v13, %v2236_v11 }
 0x4cc   :  { %3956 = vmatpush1.bf16.msra.mxu1 %v3955_v33  ;;  %v2260_v33 = vld [vmem:[%s5866_s9 + $0x280] sm:$0xff]  ;;  %4026 = vmatprep.subr.bf16.mxu0 %v4025_v14  ;;  %v4053_v14 = vpack.c.bf16 %v2267_v8, %v2266_v6  ;;  %v2283_v8 = vld [vmem:[%s5866_s9 + $0x338] sm:$0xff] }
 0x4cd   :  { %3958 = vmatprep.subr.bf16.mxu1 %v3957_v23  ;;  %v4027_v23 = vpack.c.bf16 %v2221_v18, %v2220_v16  ;;  %v4041_v27 = vpack.c.bf16 %v2261_v26, %v2260_v33  ;;  %v2250_v16 = vld [vmem:[%s5866_s9 + $0x230] sm:$0xff]  ;;  %v2251_v18 = vld [vmem:[%s5866_s9 + $0x238] sm:$0xff]  ;;  %v2269_v26 = vld [vmem:[%s5866_s9 + $0x2c8] sm:$0xff] }
 0x4cf   :  { %4028 = vmatpush3.bf16.msra.mxu0 %v4027_v23  ;;  %v2268_v23 = vld [vmem:[%s5866_s9 + $0x2c0] sm:$0xff] }
 0x4d0   :  { %3960 = vmatpush1.bf16.msra.mxu1 %v3959_v34  ;;  %v4029_v34 = vpack.c.bf16 %v2239_v31, %v2238_v28  ;;  %v4055_v31 = vpack.c.bf16 %v2251_v18, %v2250_v16  ;;  %v2301_v16 = vld [vmem:[%s5866_s9 + $0x3c8] sm:$0xff] }
 0x4d1   :  { %3978 = vmatprep.subr.bf16.mxu1 %v3977_v35  ;;  %v2222_v35 = vld [vmem:[%s5866_s9 + $0x150] sm:$0xff] }
 0x4d2   :  { %v4031_v38 = vpack.c.bf16 %v2223_v37, %v2222_v35  ;;  %4030 = vmatprep.subr.bf16.mxu0 %v4029_v34  ;;  %v2276_v34 = vld [vmem:[%s5866_s9 + $0x300] sm:$0xff] }
 0x4d3   :  { %2638 = vmatmul.mubr.msk.f32.vlgmr.msra.gmra.mrb[20].mxu1 %vm748_vm5, %v5360_v50  ;;  %v2203_v50 = vld [vmem:[%s5866_s9 + $0xb8] sm:$0xff] }
 0x4d4   :  { %3980 = vmatpush3.bf16.msra.mxu1 %v3979_v41  ;;  %v3989_v62 = vpack.c.bf16 %v2203_v50, %v2202_v60  ;;  %4032 = vmatpush3.bf16.msra.mxu0 %v4031_v38  ;;  %v4033_v41 = vpack.c.bf16 %v2241_v19, %v2240_v39  ;;  %v2292_v60 = vld [vmem:[%s5866_s9 + $0x380] sm:$0xff]  ;;  %v2293_v50 = vld [vmem:[%s5866_s9 + $0x388] sm:$0xff]  ;;  %v4057_v38 = vpack.c.bf16 %v2269_v26, %v2268_v23 }
 0x4d5   :  { %3982 = vmatprep.subr.bf16.mxu1 %v3981_v43  ;;  %v2224_v43 = vld [vmem:[%s5866_s9 + $0x160] sm:$0xff]  ;;  %v2277_v39 = vld [vmem:[%s5866_s9 + $0x308] sm:$0xff] }
 0x4d6   :  { %v4035_v24 = vpack.c.bf16 %v2225_v44, %v2224_v43  ;;  %4034 = vmatprep.subr.bf16.mxu0 %v4033_v41  ;;  %v2252_v19 = vld [vmem:[%s5866_s9 + $0x240] sm:$0xff]  ;;  %v2253_v41 = vld [vmem:[%s5866_s9 + $0x248] sm:$0xff]  ;;  %v2294_v44 = vld [vmem:[%s5866_s9 + $0x390] sm:$0xff] }
 0x4d8   :  { %3984 = vmatpush3.bf16.msra.mxu1 %v3983_v52  ;;  %4036 = vmatpush3.bf16.msra.mxu0 %v4035_v24  ;;  %v4037_v52 = vpack.c.bf16 %v2243_v51, %v2242_v49  ;;  %v2295_v24 = vld [vmem:[%s5866_s9 + $0x398] sm:$0xff]  ;;  %v2270_v51 = vld [vmem:[%s5866_s9 + $0x2d0] sm:$0xff] }
 0x4d9   :  { %3986 = vmatprep.subr.bf16.mxu1 %v3985_v55  ;;  %v2226_v55 = vld [vmem:[%s5866_s9 + $0x170] sm:$0xff] }
 0x4da   :  { %v4039_v57 = vpack.c.bf16 %v2227_v56, %v2226_v55  ;;  %4038 = vmatprep.subr.bf16.mxu0 %v4037_v52  ;;  %v2271_v52 = vld [vmem:[%s5866_s9 + $0x2d8] sm:$0xff]  ;;  %v4075_v56 = vpack.c.bf16 %v2277_v39, %v2276_v34  ;;  %v2285_v34 = vld [vmem:[%s5866_s9 + $0x348] sm:$0xff] }
 0x4dc   :  { %3988 = vmatpush3.bf16.msra.mxu1 %v3987_v61  ;;  %4040 = vmatpush3.bf16.msra.mxu0 %v4039_v57  ;;  %v4073_v61 = vpack.c.bf16 %v2293_v50, %v2292_v60  ;;  %v4059_v57 = vpack.c.bf16 %v2253_v41, %v2252_v19  ;;  %v2278_v60 = vld [vmem:[%s5866_s9 + $0x310] sm:$0xff]  ;;  %v2279_v50 = vld [vmem:[%s5866_s9 + $0x318] sm:$0xff] }
 0x4dd   :  { %3990 = vmatprep.subr.bf16.mxu1 %v3989_v62  ;;  %v1845_v62 = vlaneseq }
 0x4de   :  { %4074 = vmatprep.subr.bf16.mxu0 %v4073_v61 }
 0x4df   :  { %v5636_v1 = vshrl.u32 %v1845_v62, 7  ;;  %v4077_v62 = vpack.c.bf16 %v2295_v24, %v2294_v44  ;;  %v2286_v44 = vld [vmem:[%s5866_s9 + $0x350] sm:$0xff]  ;;  %v2287_v24 = vld [vmem:[%s5866_s9 + $0x358] sm:$0xff] }
 0x4e0   :  { %3992 = vmatpush3.bf16.msra.mxu1 %v3991_v22 }
 0x4e1   :  { %3994 = vmatprep.subr.bf16.mxu1 %v3993_v32  ;;  %v1847_v3 = vsub.s32 0, %v5636_v1  ;;  %v1851_v20 = vsub.s32 1, %v5636_v1  ;;  %v1855_v36 = vsub.s32 2, %v5636_v1  ;;  %v1859_v5 = vsub.s32 3, %v5636_v1 }
 0x4e3   :  { %v1848_v22 = vrot.slane %v5642_v42, %v1847_v3  ;;  %v1852_v32 = vrot.slane %v5642_v42, %v1851_v20  ;;  %v1856_v13 = vrot.slane %v5642_v42, %v1855_v36  ;;  %v1860_v33 = vrot.slane %v5642_v42, %v1859_v5  ;;  %v2254_v3 = vld [vmem:[%s5866_s9 + $0x250] sm:$0xff]  ;;  %v2255_v20 = vld [vmem:[%s5866_s9 + $0x258] sm:$0xff] }
 0x4e4   :  { %3996 = vmatpush3.bf16.msra.mxu1 %v3995_v48 }
 0x4e5   :  { %3998 = vmatprep.subr.bf16.mxu1 %v3997_v59  ;;  %v2244_v59 = vld [vmem:[%s5866_s9 + $0x200] sm:$0xff] }
 0x4e8   :  { %4000 = vmatpush3.bf16.msra.mxu1 %v3999_v30 }
 0x4e9   :  { %4002 = vmatprep.subr.bf16.mxu1 %v4001_v54  ;;  %v4043_v54 = vpack.c.bf16 %v2245_v4, %v2244_v59  ;;  %v4079_v59 = vpack.c.bf16 %v2279_v50, %v2278_v60  ;;  %v4063_v4 = vpack.c.bf16 %v2255_v20, %v2254_v3  ;;  %v2289_v60 = vld [vmem:[%s5866_s9 + $0x368] sm:$0xff]  ;;  %v2306_v50 = vld [vmem:[%s5866_s9 + $0x3f0] sm:$0xff] }
 0x4ea   :  { %v2290_v20 = vld [vmem:[%s5866_s9 + $0x370] sm:$0xff] }
 0x4ec   :  { %4004 = vmatpush3.bf16.msra.mxu1 %v4003_v0  ;;  %v2246_v0 = vld [vmem:[%s5866_s9 + $0x210] sm:$0xff] }
 0x4ed   :  { %4006 = vmatprep.subr.bf16.mxu1 %v4005_v46  ;;  %v4047_v25 = vpack.c.bf16 %v2247_v7, %v2246_v0  ;;  %v2248_v46 = vld [vmem:[%s5866_s9 + $0x220] sm:$0xff]  ;;  %v2298_v0 = vld [vmem:[%s5866_s9 + $0x3b0] sm:$0xff]  ;;  %v1867_v7 = vsub.s32 5, %v5636_v1 }
 0x4ee   :  { %v4051_v11 = vpack.c.bf16 %v2249_v2, %v2248_v46  ;;  %v2282_v46 = vld [vmem:[%s5866_s9 + $0x330] sm:$0xff]  ;;  %v4085_v5 = vpack.c.bf16 %v2299_v12, %v2298_v0 }
 0x4f0   :  { %4008 = vmatpush3.bf16.msra.mxu1 %v4007_v10  ;;  %v1875_v10 = vsub.s32 7, %v5636_v1 }
 0x4f1   :  { %4042 = vmatprep.subr.bf16.mxu1 %v4041_v27 }
 0x4f2   :  { %v1876_v27 = vrot.slane %v5642_v42, %v1875_v10  ;;  %v2258_v10 = vld [vmem:[%s5866_s9 + $0x270] sm:$0xff] }
 0x586   :  { %v1954_v45 = vpop.f32.mrb[16].mxu1  ;;  %v5647_v53 = vpop.f32.mrb[46].mxu0 }
 0x587   :  { %v1955_v63 = vadd.f32 %v1954_v45, %v1848_v22  ;;  %v1956_v40 = vpop.f32.mrb[17].mxu1  ;;  %v2169_v48 = vpop.f32.mrb[47].mxu0  ;;  %v2296_v22 = vld [vmem:[%s5866_s9 + $0x3a0] sm:$0xff]  ;;  %v2297_v45 = vld [vmem:[%s5866_s9 + $0x3a8] sm:$0xff] }
 0x588   :  { %v1957_v9 = vadd.f32 %v1956_v40, %v1852_v32  ;;  %v2170_v49 = vadd.f32 %v2169_v48, %v1876_v27  ;;  %v4061_v32 = vpack.c.bf16 %v2271_v52, %v2270_v51  ;;  %v2273_v40 = vld [vmem:[%s5866_s9 + $0x2e8] sm:$0xff]  ;;  %v4081_v21 = vpack.c.bf16 %v2297_v45, %v2296_v22  ;;  %v2291_v22 = vld [vmem:[%s5866_s9 + $0x378] sm:$0xff] }
 0x589   :  { %v2172_v47 = vmax.f32 %v1955_v63, 0.0  ;;  %v2272_v63 = vld [vmem:[%s5866_s9 + $0x2e0] sm:$0xff]  ;;  %v2305_v51 = vld [vmem:[%s5866_s9 + $0x3e8] sm:$0xff]  ;;  %v4095_v52 = vpack.c.bf16 %v2287_v24, %v2286_v44 }
 0x58a   :  { %v2173_v30 = vmax.f32 %v1957_v9, 0.0  ;;  %v2179_v48 = vmax.f32 %v2170_v49, 0.0  ;;  %v2280_v9 = vld [vmem:[%s5866_s9 + $0x320] sm:$0xff] }
 0x58b   :  { %v2304_v49 = vld [vmem:[%s5866_s9 + $0x3e0] sm:$0xff] }
 0x58c   :  { %2379 = vmatprep.mubr.f32.mxu1 %v2173_v30  ;;  %v4065_v30 = vpack.c.bf16 %v2273_v40, %v2272_v63  ;;  %v4166_v40 = vmov 0  }
 0x58d   :  { %2380 = vmatmul.mubr.f32.vlgmr.msra.gmra.mrb[22].mxu1 %v2172_v47  ;;  %v2256_v47 = vld [vmem:[%s5866_s9 + $0x260] sm:$0xff]  ;;  %4134 = vset.pattern.permute.xlu1 %v4166_v40 }
 0x58e   :  { %4044 = vmatpush3.bf16.msra.mxu1 %v4043_v54  ;;  %v1863_v54 = vsub.s32 4, %v5636_v1  ;;  %4135 = vset.pattern.permute.xlu0 %v4166_v40 }
 0x58f   :  { %4046 = vmatprep.subr.bf16.mxu1 %v4045_v58  ;;  %v2257_v58 = vld [vmem:[%s5866_s9 + $0x268] sm:$0xff] }
 0x590   :  { %v4067_v36 = vpack.c.bf16 %v2257_v58, %v2256_v47  ;;  %v1864_v2 = vrot.slane %v5642_v42, %v1863_v54 }
 0x592   :  { %4048 = vmatpush3.bf16.msra.mxu1 %v4047_v25  ;;  %v2275_v25 = vld [vmem:[%s5866_s9 + $0x2f8] sm:$0xff] }
 0x593   :  { %4050 = vmatprep.subr.bf16.mxu1 %v4049_v29  ;;  %v4083_v29 = vpack.c.bf16 %v2281_v15, %v2280_v9  ;;  %v4069_v6 = vpack.c.bf16 %v2275_v25, %v2274_v17 }
 0x596   :  { %v2025_v28 = vpop.f32.mrb[18].mxu1  ;;  %4052 = vmatpush3.bf16.msra.mxu1 %v4051_v11  ;;  %v2259_v11 = vld [vmem:[%s5866_s9 + $0x278] sm:$0xff] }
 0x597   :  { %v2026_v35 = vadd.f32 %v2025_v28, %v1856_v13  ;;  %v2027_v37 = vpop.f32.mrb[19].mxu1  ;;  %4054 = vmatprep.subr.bf16.mxu1 %v4053_v14  ;;  %v1868_v13 = vrot.slane %v5642_v42, %v1867_v7  ;;  %v2300_v14 = vld [vmem:[%s5866_s9 + $0x3c0] sm:$0xff]  ;;  %v4071_v23 = vpack.c.bf16 %v2259_v11, %v2258_v10 }
 0x598   :  { %v2028_v43 = vadd.f32 %v2027_v37, %v1860_v33  ;;  %v4087_v33 = vpack.c.bf16 %v2283_v8, %v2282_v46  ;;  %v4089_v28 = vpack.c.bf16 %v2301_v16, %v2300_v14  ;;  %v2302_v37 = vld [vmem:[%s5866_s9 + $0x3d0] sm:$0xff] }
 0x599   :  { %v2174_v61 = vmax.f32 %v2026_v35, 0.0 }
 0x59a   :  { %v2175_v55 = vmax.f32 %v2028_v43, 0.0  ;;  %4056 = vmatpush3.bf16.msra.mxu1 %v4055_v31  ;;  %v2284_v31 = vld [vmem:[%s5866_s9 + $0x340] sm:$0xff] }
 0x59b   :  { %4058 = vmatprep.subr.bf16.mxu1 %v4057_v38  ;;  %v2303_v38 = vld [vmem:[%s5866_s9 + $0x3d8] sm:$0xff]  ;;  %v4091_v19 = vpack.c.bf16 %v2285_v34, %v2284_v31 }
 0x59c   :  { %2449 = vmatprep.mubr.f32.mxu0 %v2175_v55  ;;  %v4093_v43 = vpack.c.bf16 %v2303_v38, %v2302_v37  ;;  %v1871_v55 = vsub.s32 6, %v5636_v1 }
 0x59d   :  { %2450 = vmatmul.mubr.f32.vlgmr.msra.gmra.mrb[48].mxu0 %v2174_v61  ;;  %v2307_v61 = vld [vmem:[%s5866_s9 + $0x3f8] sm:$0xff] }
 0x59e   :  { %4076 = vmatpush3.bf16.msra.mxu0 %v4075_v56  ;;  %4060 = vmatpush3.bf16.msra.mxu1 %v4059_v57  ;;  %v4097_v56 = vpack.c.bf16 %v2305_v51, %v2304_v49  ;;  %v2288_v57 = vld [vmem:[%s5866_s9 + $0x360] sm:$0xff]  ;;  %v4101_v3 = vpack.c.bf16 %v2307_v61, %v2306_v50  ;;  %s4167_s9 = smov 127  }
 0x59f   :  { %2589 = vmatprep.mubr.f32.mxu0 %v2179_v48  ;;  %4078 = vmatprep.subr.bf16.mxu0 %v4077_v62  ;;  %v4099_v1 = vpack.c.bf16 %v2289_v60, %v2288_v57  ;;  %v1872_v62 = vrot.slane %v5642_v42, %v1871_v55 }
 0x5a0   :  { %4062 = vmatprep.subr.bf16.mxu1 %v4061_v32  ;;  %v4103_v32 = vpack.c.bf16 %v2291_v22, %v2290_v20 }
 0x5a1   :  { %v2168_v45 = vadd.f32 %v5647_v53, %v1872_v62 }
 0x5a2   :  { %4080 = vmatpush3.bf16.msra.mxu0 %v4079_v59  ;;  %4064 = vmatpush3.bf16.msra.mxu1 %v4063_v4  ;;  %v2640_v4 = vld [vmem:[%s5867_s10] ss:$0 sm:$0xff]  ;;  %s4168_s10 = smov [#allocation4]  }
 0x5a3   :  { %4082 = vmatprep.subr.bf16.mxu0 %v4081_v21  ;;  %4066 = vmatprep.subr.bf16.mxu1 %v4065_v30  ;;  %v2178_v63 = vmax.f32 %v2168_v45, 0.0  ;;  %s2622_s28 = sshll.u32 %s4168_s10, 4  ;;  %s2623_s28 = int_to_ptr.vmem [resolvable:$true] %s2622_s28 }
 0x5a4   :  { %s4136_s29 = scalar_lea.vmem %s2623_s28, 32  ;;  %p4141_p1 = scmp.lt.s32.totalorder %s2623_s28, %s2623_s28 }
 0x5a5   :  { %p4137_p0 = scmp.ne.s32.totalorder %s2623_s28, %s4136_s29  ;;  %p4142_p2 = scmp.lt.s32.totalorder %s4136_s29, %s4136_s29 }
 0x5a6   :  { %4084 = vmatpush3.bf16.msra.mxu0 %v4083_v29  ;;  %v2096_v18 = vpop.f32.mrb[20].mxu1  ;;  %4068 = vmatpush3.bf16.msra.mxu1 %v4067_v36 }
 0x5a7   :  { %v2097_v26 = vadd.f32 %v2096_v18, %v1864_v2  ;;  %v2098_v27 = vpop.f32.mrb[21].mxu1  ;;  %4086 = vmatprep.subr.bf16.mxu0 %v4085_v5  ;;  %4070 = vmatprep.subr.bf16.mxu1 %v4069_v6  ;;  %p4143_p3 = por %p4142_p2, %p4141_p1 }
 0x5a8   :  { %v2099_v35 = vadd.f32 %v2098_v27, %v1868_v13 }
 0x5a9   :  { %v2176_v41 = vmax.f32 %v2097_v26, 0.0  ;;  %p4144_p4 = pnand %p4143_p3, %p4137_p0 }
 0x5aa   :  { %v2177_v39 = vmax.f32 %v2099_v35, 0.0  ;;  %4088 = vmatpush3.bf16.msra.mxu0 %v4087_v33  ;;  %4072 = vmatpush3.bf16.msra.mxu1 %v4071_v23 }
 0x5ab   :  { %4090 = vmatprep.subr.bf16.mxu0 %v4089_v28 }
 0x5ac   :  { %2519 = vmatprep.mubr.f32.mxu1 %v2177_v39 }
 0x5ad   :  { %2520 = vmatmul.mubr.f32.vlgmr.msra.gmra.mrb[24].mxu1 %v2176_v41 }
 0x5ae   :  { %4092 = vmatpush3.bf16.msra.mxu0 %v4091_v19 }
 0x5af   :  { %4094 = vmatprep.subr.bf16.mxu0 %v4093_v43 }
 0x5b2   :  { %4096 = vmatpush3.bf16.msra.mxu0 %v4095_v52 }
 0x5b3   :  { %4098 = vmatprep.subr.bf16.mxu0 %v4097_v56 }
 0x5b6   :  { %4100 = vmatpush3.bf16.msra.mxu0 %v4099_v1 }
 0x5b7   :  { %4102 = vmatprep.subr.bf16.mxu0 %v4101_v3 }
 0x5ba   :  { %4104 = vmatpush3.bf16.msra.mxu0 %v4103_v32 }
 0x5bd   :  { %2590 = vmatmul.mubr.f32.vlgmr.msra.gmra.mrb[50].mxu0 %v2178_v63 }
 0x660   :  { %v2957_v42 = vpop.f32.mrb[22].mxu1 }
 0x661   :  { %v2958_v48 = vpop.f32.mrb[23].mxu1 }
 0x662   :  { %v2959_v59 = vadd.f32 %v2958_v48, %v2957_v42 }
 0x664   :  { %v2382_v21 = vadd.f32 %v2959_v59, %v2640_v4 }
 0x670   :  { %v2992_v9 = vpop.f32.mrb[48].mxu0 }
 0x671   :  { %v2993_v15 = vpop.f32.mrb[49].mxu0 }
 0x672   :  { %v2994_v30 = vadd.f32 %v2993_v15, %v2992_v9 }
 0x674   :  { %v2452_v54 = vadd.f32 %v2994_v30, %v2382_v21 }
 0x680   :  { %v3027_v53 = vpop.f32.mrb[24].mxu1 }
 0x681   :  { %v3028_v47 = vpop.f32.mrb[25].mxu1 }
 0x682   :  { %v3029_v58 = vadd.f32 %v3028_v47, %v3027_v53 }
 0x684   :  { %v2522_v0 = vadd.f32 %v3029_v58, %v2452_v54 }
 0x690   :  { %v3062_v7 = vpop.f32.mrb[50].mxu0 }
 0x691   :  { %v3063_v12 = vpop.f32.mrb[51].mxu0 }
 0x692   :  { %v3064_v17 = vadd.f32 %v3063_v12, %v3062_v7 }
 0x694   :  { %v2592_v25 = vadd.f32 %v3064_v17, %v2522_v0 }
 0x696   :  { %2601 = vrot.lane.b32.xlu1 %v2592_v25, %s4167_s9 }
 0x69a   :  { %2597 = vperm.xlu1 %4134, %v2592_v25  }
 0x708   :  { %v2602_v29 = vpop.permute.xlu1 %2601 }
 0x709   :  { %v2605_v36 = vsel %vm2604_vm8, %v2602_v29, 0.0 }
 0x70a   :  { %2606 = vadd.xlane.f32.xlu0 %v2605_v36 }
 0x719   :  { %v2598_v46 = vpop.permute.xlu1 %2597 }
 0x71a   :  { %v2600_v5 = vadd.f32 %v2598_v46, %v2592_v25 }
 0x797   :  { %v2607_v2 = vpop.xlane.xlu0 %2606 }
 0x798   :  { %v2608_v6 = vmul.f32 0.16666667, %v2607_v2 }
 0x79a   :  { %v2609_v8 = vsub.f32 %v2600_v5, %v2608_v6 }
 0x79c   :  { %2612 = vrot.lane.b32.xlu1 %v2609_v8, %s4167_s9 }
 0x80e   :  { %v2613_v10 = vpop.permute.xlu1 %2612 }
 0x80f   :  { %2615 = vst.msk [vmem:[#allocation4] sm:$0x3] %vm2604_vm8, %v2613_v10 }
 0x810   :  { %4147 = shalt.err (!%p4144_p4)
}
 0x811   :  { %s4148_s26 = scalar_lea.hbm %s5868_s11, 32 }
 0x812   :  { %p4149_p5 = scmp.ne.s32.totalorder %s5868_s11, %s4148_s26  ;;  %p4152_p6 = scmp.lt.u32.totalorder %s4148_s26, %s5868_s11 }
 0x814   :  { %p4154_p7 = pnand %p4152_p6, %p4149_p5 }
 0x816   :  { %4157 = shalt.err (!%p4154_p7)
}
 0x817   :  { %2625 = dma.vmem_to_hbm [thread:$0]  %s2623_s28, 32, %s5868_s11, [#allocation5]  }
 0x818   :  { %4158 = dma.done.wait [#allocation5], 32  }
 0x819   :  { %4159 = vsyncadd [#allocation5], 4294967264 }
 0x81a   :  { %2629 = vsyncpa [#allocation5], 1 }

</bundles_post_ra>
